<compile_context>
chip_gen: v7x
topology: tpu7x:2x2x1
jax: 0.10.0
libtpu: 0.0.40
codegen_flags: <defaults>
</compile_context>

<pallas_src>
import functools

import jax
import jax.numpy as jnp
from jax.experimental import pallas as pl
from jax.experimental.pallas import tpu as pltpu

EPS = 1e-5
VMEM_LIMIT_BYTES = 48 * 1024 * 1024


def _cparams():
    return pltpu.CompilerParams(
        dimension_semantics=("parallel",),
        vmem_limit_bytes=VMEM_LIMIT_BYTES,
    )


# --------------------------------------------------------------------------- kernels
def conv1_ds_kernel(xph_ref, w1_ref, wd_ref, y1_ref, xd_ref, s1_ref, sd_ref,
                    *, stride, ho, wo, cin, cout, hph):
    """3x3 stride-s conv (9 in-VMEM taps) + fused 1x1 stride-s downsample conv,
    plus per-block BatchNorm partial statistics (sum, sum_sq) for both outputs.

    xph_ref: (1, s*s*hph, wph, cin)  phase-decomposed padded input (bf16)
    w1_ref : (9*cin, cout)  tap-major conv1 weights (bf16)
    wd_ref : (cin, cout)    downsample 1x1 weights (bf16)
    y1_ref : (1, ho, wo, cout) raw conv1 output (bf16)
    xd_ref : (1, ho*wo, cout)  raw downsample output (bf16)
    s1_ref/sd_ref: (1, 2, cout) per-block [sum; sum_sq] in f32
    """
    xv = xph_ref[0]                                   # (s*s*hph, wph, cin) bf16
    w1 = w1_ref[...]                                  # (9*cin, cout) bf16

    acc = jnp.zeros((ho * wo, cout), jnp.float32)
    for ky in range(3):
        for kx in range(3):
            p = (ky % stride) * stride + (kx % stride)    # phase index
            oy, ox = ky // stride, kx // stride           # offset within phase
            tap = xv[p * hph + oy:p * hph + oy + ho, ox:ox + wo, :]
            tap = tap.reshape(ho * wo, cin)
            k = ky * 3 + kx
            acc += jnp.dot(tap, w1[k * cin:(k + 1) * cin, :],
                           preferred_element_type=jnp.float32)

    y1_ref[0] = acc.reshape(ho, wo, cout).astype(y1_ref.dtype)
    s1_ref[0] = jnp.concatenate(
        [jnp.sum(acc, axis=0, keepdims=True),
         jnp.sum(acc * acc, axis=0, keepdims=True)], axis=0)

    # identity / downsample path: 1x1 stride-s conv == the center tap (ky=kx=1)
    pc = (1 % stride) * stride + (1 % stride)
    oc = 1 // stride
    ctr = xv[pc * hph + oc:pc * hph + oc + ho, oc:oc + wo, :].reshape(ho * wo, cin)
    xd = jnp.dot(ctr, wd_ref[...], preferred_element_type=jnp.float32)
    xd_ref[0] = xd.astype(xd_ref.dtype)
    sd_ref[0] = jnp.concatenate(
        [jnp.sum(xd, axis=0, keepdims=True),
         jnp.sum(xd * xd, axis=0, keepdims=True)], axis=0)


def conv2_kernel(y1_ref, sc1_ref, sh1_ref, w2_ref, y2_ref, s2_ref, pad_ref,
                 *, ho, wo, c):
    """Fused BN1 affine + ReLU, in-VMEM zero padding, 3x3 stride-1 conv (9 taps),
    and BN2 partial statistics.

    y1_ref: (1, ho, wo, c) raw conv1 output (bf16)
    sc1/sh1: (1, c) BN1 scale/shift (f32, computed from the global stats)
    w2_ref: (9*c, c) tap-major conv2 weights (bf16)
    y2_ref: (1, ho*wo, c) raw conv2 output (bf16)
    s2_ref: (1, 2, c) per-block [sum; sum_sq] (f32)
    pad_ref: VMEM scratch (ho+2, wo+2, c) f32
    """
    sc = sc1_ref[...].reshape(1, 1, c)
    sh = sh1_ref[...].reshape(1, 1, c)
    y1n = jnp.maximum(y1_ref[0].astype(jnp.float32) * sc + sh, 0.0)   # BN1 + ReLU

    pad_ref[...] = jnp.zeros_like(pad_ref)            # zero border (conv padding=1)
    pad_ref[1:ho + 1, 1:wo + 1, :] = y1n              # interior

    w2 = w2_ref[...]                                  # (9*c, c) bf16
    acc = jnp.zeros((ho * wo, c), jnp.float32)
    for ky in range(3):
        for kx in range(3):
            tap = pad_ref[ky:ky + ho, kx:kx + wo, :].astype(jnp.bfloat16)
            tap = tap.reshape(ho * wo, c)
            k = ky * 3 + kx
            acc += jnp.dot(tap, w2[k * c:(k + 1) * c, :],
                           preferred_element_type=jnp.float32)

    y2_ref[0] = acc.astype(y2_ref.dtype)
    s2_ref[0] = jnp.concatenate(
        [jnp.sum(acc, axis=0, keepdims=True),
         jnp.sum(acc * acc, axis=0, keepdims=True)], axis=0)


def se_residual_kernel(xd_ref, y2_ref, scd_ref, shd_ref, sc2_ref, sh2_ref,
                       w1_ref, b1_ref, w2_ref, b2_ref, o_ref):
    """Fused BNd affine, BN2 affine, SE squeeze/excite, gate, residual add, ReLU.

    xd_ref/y2_ref: (1, hw, c) raw identity / conv-branch outputs (bf16)
    scd/shd/sc2/sh2: (1, c) BN affines (f32)
    w1: (c, hidden)  b1: (1, hidden)  w2: (hidden, c)  b2: (1, c)
    o_ref: (1, hw, c) f32
    """
    xd = xd_ref[0].astype(jnp.float32) * scd_ref[...] + shd_ref[...]   # (hw, c)
    y2 = y2_ref[0].astype(jnp.float32) * sc2_ref[...] + sh2_ref[...]   # (hw, c)

    s = jnp.mean(xd, axis=0, keepdims=True)                            # squeeze (1, c)
    h = jnp.dot(s, w1_ref[...], preferred_element_type=jnp.float32) + b1_ref[...]
    h = jnp.maximum(h, 0.0)
    g = jnp.dot(h, w2_ref[...], preferred_element_type=jnp.float32) + b2_ref[...]
    g = jax.nn.sigmoid(g)                                              # excitation (1, c)

    o_ref[0] = jnp.maximum(xd * g + y2, 0.0)


# --------------------------------------------------------------------------- wrappers
def conv1_downsample(x_phases, w1_mat, wd_mat, *, stride, ho, wo, hph, cin, cout):
    n = x_phases.shape[0]
    ss = stride * stride
    kern = functools.partial(conv1_ds_kernel, stride=stride, ho=ho, wo=wo,
                             cin=cin, cout=cout, hph=hph)
    return pl.pallas_call(
        kern,
        grid=(n,),
        in_specs=[
            pl.BlockSpec((1, ss * hph, x_phases.shape[2], cin), lambda i: (i, 0, 0, 0)),
            pl.BlockSpec((9 * cin, cout), lambda i: (0, 0)),
            pl.BlockSpec((cin, cout), lambda i: (0, 0)),
        ],
        out_specs=(
            pl.BlockSpec((1, ho, wo, cout), lambda i: (i, 0, 0, 0)),
            pl.BlockSpec((1, ho * wo, cout), lambda i: (i, 0, 0)),
            pl.BlockSpec((1, 2, cout), lambda i: (i, 0, 0)),
            pl.BlockSpec((1, 2, cout), lambda i: (i, 0, 0)),
        ),
        out_shape=(
            jax.ShapeDtypeStruct((n, ho, wo, cout), jnp.bfloat16),
            jax.ShapeDtypeStruct((n, ho * wo, cout), jnp.bfloat16),
            jax.ShapeDtypeStruct((n, 2, cout), jnp.float32),
            jax.ShapeDtypeStruct((n, 2, cout), jnp.float32),
        ),
        compiler_params=_cparams(),
    )(x_phases, w1_mat, wd_mat)


def conv2(y1_raw, sc1, sh1, w2_mat, *, ho, wo, cout):
    n = y1_raw.shape[0]
    kern = functools.partial(conv2_kernel, ho=ho, wo=wo, c=cout)
    return pl.pallas_call(
        kern,
        grid=(n,),
        in_specs=[
            pl.BlockSpec((1, ho, wo, cout), lambda i: (i, 0, 0, 0)),
            pl.BlockSpec((1, cout), lambda i: (0, 0)),
            pl.BlockSpec((1, cout), lambda i: (0, 0)),
            pl.BlockSpec((9 * cout, cout), lambda i: (0, 0)),
        ],
        out_specs=(
            pl.BlockSpec((1, ho * wo, cout), lambda i: (i, 0, 0)),
            pl.BlockSpec((1, 2, cout), lambda i: (i, 0, 0)),
        ),
        out_shape=(
            jax.ShapeDtypeStruct((n, ho * wo, cout), jnp.bfloat16),
            jax.ShapeDtypeStruct((n, 2, cout), jnp.float32),
        ),
        scratch_shapes=[pltpu.VMEM((ho + 2, wo + 2, cout), jnp.float32)],
        compiler_params=_cparams(),
    )(y1_raw, sc1, sh1, w2_mat)


def se_residual(xd_raw, y2_raw, scd, shd, sc2, sh2, se_w1, se_b1, se_w2, se_b2):
    n, hw, c = xd_raw.shape
    hidden = se_w1.shape[1]
    return pl.pallas_call(
        se_residual_kernel,
        grid=(n,),
        in_specs=[
            pl.BlockSpec((1, hw, c), lambda i: (i, 0, 0)),
            pl.BlockSpec((1, hw, c), lambda i: (i, 0, 0)),
            pl.BlockSpec((1, c), lambda i: (0, 0)),
            pl.BlockSpec((1, c), lambda i: (0, 0)),
            pl.BlockSpec((1, c), lambda i: (0, 0)),
            pl.BlockSpec((1, c), lambda i: (0, 0)),
            pl.BlockSpec((c, hidden), lambda i: (0, 0)),
            pl.BlockSpec((1, hidden), lambda i: (0, 0)),
            pl.BlockSpec((hidden, c), lambda i: (0, 0)),
            pl.BlockSpec((1, c), lambda i: (0, 0)),
        ],
        out_specs=pl.BlockSpec((1, hw, c), lambda i: (i, 0, 0)),
        out_shape=jax.ShapeDtypeStruct((n, hw, c), jnp.float32),
        compiler_params=_cparams(),
    )(xd_raw, y2_raw, scd, shd, sc2, sh2, se_w1, se_b1, se_w2, se_b2)


# --------------------------------------------------------------------------- glue
def bn_affine(stats, count, gamma, beta):
    """Combine per-block (sum, sum_sq) into training-mode BN scale/shift (f32)."""
    ssum = jnp.sum(stats[:, 0, :], axis=0)
    ssq = jnp.sum(stats[:, 1, :], axis=0)
    mean = ssum / count
    var = jnp.maximum(ssq / count - mean * mean, 0.0)     # biased var (PyTorch train)
    scale = gamma * jax.lax.rsqrt(var + EPS)
    shift = beta - mean * scale
    return scale.reshape(1, -1).astype(jnp.float32), shift.reshape(1, -1).astype(jnp.float32)


def make_phases(x_pad, stride):
    """Phase-decompose the padded NHWC input: phase (py,px) = x_pad[:, py::s, px::s, :].
    Returned shape (N, s*s*hph, wph, C) — same total bytes as x_pad (no 9x expansion)."""
    n, hp, wp, c = x_pad.shape
    hph = -(-hp // stride)
    wph = -(-wp // stride)
    xp = jnp.pad(x_pad, ((0, 0), (0, hph * stride - hp), (0, wph * stride - wp), (0, 0)))
    xr = xp.reshape(n, hph, stride, wph, stride, c)
    xr = jnp.transpose(xr, (0, 2, 4, 1, 3, 5))            # (n, py, px, a, b, c)
    return xr.reshape(n, stride * stride * hph, wph, c), hph, wph


def residual_block_forward(x_nchw, params, *, stride, out_channels):
    n, cin, h, w = x_nchw.shape
    cout = out_channels
    ho = (h + 2 - 3) // stride + 1
    wo = (w + 2 - 3) // stride + 1

    x = jnp.transpose(x_nchw, (0, 2, 3, 1)).astype(jnp.bfloat16)       # NHWC bf16
    x_pad = jnp.pad(x, ((0, 0), (1, 1), (1, 1), (0, 0)))
    xph, hph, _ = make_phases(x_pad, stride)

    has_ds = (stride != 1 or cin != cout)
    wd_mat = params["wd_mat"] if has_ds else jnp.eye(cin, dtype=jnp.bfloat16)

    # Pass A: conv1 (3x3, stride) + downsample 1x1 (fused) + BN partial stats
    y1_raw, xd_raw, st1, std = conv1_downsample(
        xph, params["w1_mat"], wd_mat,
        stride=stride, ho=ho, wo=wo, hph=hph, cin=cin, cout=cout)

    count = float(n * ho * wo)
    sc1, sh1 = bn_affine(st1, count, params["bn1_gamma"], params["bn1_beta"])

    # Pass B: BN1 affine + ReLU + conv2 (3x3, stride 1) + BN2 partial stats
    y2_raw, st2 = conv2(y1_raw, sc1, sh1, params["w2_mat"], ho=ho, wo=wo, cout=cout)
    sc2, sh2 = bn_affine(st2, count, params["bn2_gamma"], params["bn2_beta"])

    if has_ds:
        scd, shd = bn_affine(std, count, params["bnd_gamma"], params["bnd_beta"])
    else:
        scd = jnp.ones((1, cout), jnp.float32)
        shd = jnp.zeros((1, cout), jnp.float32)

    # Pass C: BNd + BN2 affines + SE gate on identity + residual add + final ReLU
    out = se_residual(xd_raw, y2_raw, scd, shd, sc2, sh2,
                      params["se_w1"], params["se_b1"],
                      params["se_w2"], params["se_b2"])
    out = out.reshape(n, ho, wo, cout)
    return jnp.transpose(out, (0, 3, 1, 2)).astype(jnp.float32)        # back to NCHW


# --------------------------------------------------------------------------- params
def init_params(key, cin, cout, r):
    hidden = max(cout // r, 1)
    ks = jax.random.split(key, 7)

    def nrm(k, shape, scale):
        return scale * jax.random.normal(k, shape, dtype=jnp.float32)

    p = {}
    # Conv weights in PyTorch layout (Cout, Cin, KH, KW), reshaped to the tap-major
    # matmul layout [(ky*3+kx)*Cin + ic, oc], stored bf16 for the MXU.
    w1 = nrm(ks[0], (cout, cin, 3, 3), 0.1)
    w2 = nrm(ks[1], (cout, cout, 3, 3), 0.1)
    wd = nrm(ks[2], (cout, cin, 1, 1), 0.1)
    p["w1_mat"] = jnp.transpose(w1, (2, 3, 1, 0)).reshape(9 * cin, cout).astype(jnp.bfloat16)
    p["w2_mat"] = jnp.transpose(w2, (2, 3, 1, 0)).reshape(9 * cout, cout).astype(jnp.bfloat16)
    p["wd_mat"] = jnp.transpose(wd, (2, 3, 1, 0)).reshape(cin, cout).astype(jnp.bfloat16)

    for name, k in [("bn1", ks[3]), ("bn2", ks[4]), ("bnd", ks[5])]:
        kg, kb = jax.random.split(k)
        p[f"{name}_gamma"] = 1.0 + 0.1 * jax.random.normal(kg, (cout,), dtype=jnp.float32)
        p[f"{name}_beta"] = 0.1 * jax.random.normal(kb, (cout,), dtype=jnp.float32)

    # SE excitation: PyTorch Linear weights are (out_features, in_features); store transposed.
    kw1, kb1, kw2, kb2 = jax.random.split(ks[6], 4)
    p["se_w1"] = jnp.transpose(nrm(kw1, (hidden, cout), 0.2))          # (cout, hidden)
    p["se_b1"] = 0.1 * jax.random.normal(kb1, (1, hidden), dtype=jnp.float32)
    p["se_w2"] = jnp.transpose(nrm(kw2, (cout, hidden), 0.2))          # (hidden, cout)
    p["se_b2"] = 0.1 * jax.random.normal(kb2, (1, cout), dtype=jnp.float32)
    return p


# --------------------------------------------------------------------------- main
if __name__ == "__main__":
    N, Cin, Cout, H, W, STRIDE, R = 2, 16, 32, 16, 16, 2, 16

    key = jax.random.PRNGKey(0)
    kx, kp = jax.random.split(key)
    x = jax.random.normal(kx, (N, Cin, H, W), dtype=jnp.float32)       # NCHW, like PyTorch
    params = init_params(kp, Cin, Cout, R)

    fwd = jax.jit(functools.partial(residual_block_forward, stride=STRIDE, out_channels=Cout))
    out = fwd(x, params)
    out = jax.block_until_ready(out)

    assert out.shape == (N, Cout, H // STRIDE, W // STRIDE), out.shape
    assert bool(jnp.all(out >= 0.0))      # final ReLU
    assert bool(jnp.all(jnp.isfinite(out)))
    print("KERNEL_OK")
</pallas_src>

<mosaic_0001>
module attributes {stable_mosaic.version = 11 : i64} {
  func.func @conv1_ds_kernel(%arg0: i32, %arg1: memref<1x36x9x16xbf16, #tpu.memory_space<vmem>>, %arg2: memref<144x32xbf16, #tpu.memory_space<vmem>>, %arg3: memref<16x32xbf16, #tpu.memory_space<vmem>>, %arg4: memref<1x8x8x32xbf16, #tpu.memory_space<vmem>>, %arg5: memref<1x64x32xbf16, #tpu.memory_space<vmem>>, %arg6: memref<1x2x32xf32, #tpu.memory_space<vmem>>, %arg7: memref<1x2x32xf32, #tpu.memory_space<vmem>>) attributes {dimension_semantics = [#tpu.dimension_semantics<parallel>], iteration_bounds = array<i64: 2>, scalar_prefetch = 0 : i64, scratch_operands = 0 : i64, tpu.core_type = #tpu.core_type<tc>, window_params = [{transform_indices = @transform_0, window_bounds = array<i64: 1, 36, 9, 16>}, {pipeline_mode = #tpu.pipeline_mode<synchronous>, transform_indices = @transform_1, window_bounds = array<i64: 144, 32>}, {pipeline_mode = #tpu.pipeline_mode<synchronous>, transform_indices = @transform_2, window_bounds = array<i64: 16, 32>}, {transform_indices = @transform_3, window_bounds = array<i64: 1, 8, 8, 32>}, {transform_indices = @transform_4, window_bounds = array<i64: 1, 64, 32>}, {transform_indices = @transform_5, window_bounds = array<i64: 1, 2, 32>}, {transform_indices = @transform_6, window_bounds = array<i64: 1, 2, 32>}]} {
    %c0 = arith.constant 0 : index
    %c0_0 = arith.constant 0 : index
    %c0_1 = arith.constant 0 : index
    %c0_2 = arith.constant 0 : index
    %0 = vector.load %arg1[%c0, %c0_0, %c0_1, %c0_2] : memref<1x36x9x16xbf16, #tpu.memory_space<vmem>>, vector<1x36x9x16xbf16>
    %1 = vector.shape_cast %0 : vector<1x36x9x16xbf16> to vector<36x9x16xbf16>
    %c0_3 = arith.constant 0 : index
    %c0_4 = arith.constant 0 : index
    %2 = vector.load %arg2[%c0_3, %c0_4] : memref<144x32xbf16, #tpu.memory_space<vmem>>, vector<144x32xbf16>
    %cst = arith.constant 0.000000e+00 : f32
    %3 = vector.broadcast %cst : f32 to vector<64x32xf32>
    %4 = vector.extract_strided_slice %1 {offsets = [0, 0, 0], sizes = [8, 8, 16], strides = [1, 1, 1]} : vector<36x9x16xbf16> to vector<8x8x16xbf16>
    %5 = vector.shape_cast %4 : vector<8x8x16xbf16> to vector<64x16xbf16>
    %6 = vector.extract_strided_slice %2 {offsets = [0, 0], sizes = [16, 32], strides = [1, 1]} : vector<144x32xbf16> to vector<16x32xbf16>
    %cst_5 = arith.constant dense<0.000000e+00> : vector<64x32xf32>
    %7 = tpu.matmul %5, %6, %cst_5 {dimension_numbers = #tpu.dot_dimension_numbers<[1], [0], [0], [1], [0, 0, 1, 1], [], []>} : vector<64x16xbf16>, vector<16x32xbf16>, vector<64x32xf32> -> vector<64x32xf32>
    %8 = arith.addf %3, %7 : vector<64x32xf32>
    %9 = vector.extract_strided_slice %1 {offsets = [9, 0, 0], sizes = [8, 8, 16], strides = [1, 1, 1]} : vector<36x9x16xbf16> to vector<8x8x16xbf16>
    %10 = vector.shape_cast %9 : vector<8x8x16xbf16> to vector<64x16xbf16>
    %11 = vector.extract_strided_slice %2 {offsets = [16, 0], sizes = [16, 32], strides = [1, 1]} : vector<144x32xbf16> to vector<16x32xbf16>
    %cst_6 = arith.constant dense<0.000000e+00> : vector<64x32xf32>
    %12 = tpu.matmul %10, %11, %cst_6 {dimension_numbers = #tpu.dot_dimension_numbers<[1], [0], [0], [1], [0, 0, 1, 1], [], []>} : vector<64x16xbf16>, vector<16x32xbf16>, vector<64x32xf32> -> vector<64x32xf32>
    %13 = arith.addf %8, %12 : vector<64x32xf32>
    %14 = vector.extract_strided_slice %1 {offsets = [0, 1, 0], sizes = [8, 8, 16], strides = [1, 1, 1]} : vector<36x9x16xbf16> to vector<8x8x16xbf16>
    %15 = vector.shape_cast %14 : vector<8x8x16xbf16> to vector<64x16xbf16>
    %16 = vector.extract_strided_slice %2 {offsets = [32, 0], sizes = [16, 32], strides = [1, 1]} : vector<144x32xbf16> to vector<16x32xbf16>
    %cst_7 = arith.constant dense<0.000000e+00> : vector<64x32xf32>
    %17 = tpu.matmul %15, %16, %cst_7 {dimension_numbers = #tpu.dot_dimension_numbers<[1], [0], [0], [1], [0, 0, 1, 1], [], []>} : vector<64x16xbf16>, vector<16x32xbf16>, vector<64x32xf32> -> vector<64x32xf32>
    %18 = arith.addf %13, %17 : vector<64x32xf32>
    %19 = vector.extract_strided_slice %1 {offsets = [18, 0, 0], sizes = [8, 8, 16], strides = [1, 1, 1]} : vector<36x9x16xbf16> to vector<8x8x16xbf16>
    %20 = vector.shape_cast %19 : vector<8x8x16xbf16> to vector<64x16xbf16>
    %21 = vector.extract_strided_slice %2 {offsets = [48, 0], sizes = [16, 32], strides = [1, 1]} : vector<144x32xbf16> to vector<16x32xbf16>
    %cst_8 = arith.constant dense<0.000000e+00> : vector<64x32xf32>
    %22 = tpu.matmul %20, %21, %cst_8 {dimension_numbers = #tpu.dot_dimension_numbers<[1], [0], [0], [1], [0, 0, 1, 1], [], []>} : vector<64x16xbf16>, vector<16x32xbf16>, vector<64x32xf32> -> vector<64x32xf32>
    %23 = arith.addf %18, %22 : vector<64x32xf32>
    %24 = vector.extract_strided_slice %1 {offsets = [27, 0, 0], sizes = [8, 8, 16], strides = [1, 1, 1]} : vector<36x9x16xbf16> to vector<8x8x16xbf16>
    %25 = vector.shape_cast %24 : vector<8x8x16xbf16> to vector<64x16xbf16>
    %26 = vector.extract_strided_slice %2 {offsets = [64, 0], sizes = [16, 32], strides = [1, 1]} : vector<144x32xbf16> to vector<16x32xbf16>
    %cst_9 = arith.constant dense<0.000000e+00> : vector<64x32xf32>
    %27 = tpu.matmul %25, %26, %cst_9 {dimension_numbers = #tpu.dot_dimension_numbers<[1], [0], [0], [1], [0, 0, 1, 1], [], []>} : vector<64x16xbf16>, vector<16x32xbf16>, vector<64x32xf32> -> vector<64x32xf32>
    %28 = arith.addf %23, %27 : vector<64x32xf32>
    %29 = vector.extract_strided_slice %1 {offsets = [18, 1, 0], sizes = [8, 8, 16], strides = [1, 1, 1]} : vector<36x9x16xbf16> to vector<8x8x16xbf16>
    %30 = vector.shape_cast %29 : vector<8x8x16xbf16> to vector<64x16xbf16>
    %31 = vector.extract_strided_slice %2 {offsets = [80, 0], sizes = [16, 32], strides = [1, 1]} : vector<144x32xbf16> to vector<16x32xbf16>
    %cst_10 = arith.constant dense<0.000000e+00> : vector<64x32xf32>
    %32 = tpu.matmul %30, %31, %cst_10 {dimension_numbers = #tpu.dot_dimension_numbers<[1], [0], [0], [1], [0, 0, 1, 1], [], []>} : vector<64x16xbf16>, vector<16x32xbf16>, vector<64x32xf32> -> vector<64x32xf32>
    %33 = arith.addf %28, %32 : vector<64x32xf32>
    %34 = vector.extract_strided_slice %1 {offsets = [1, 0, 0], sizes = [8, 8, 16], strides = [1, 1, 1]} : vector<36x9x16xbf16> to vector<8x8x16xbf16>
    %35 = vector.shape_cast %34 : vector<8x8x16xbf16> to vector<64x16xbf16>
    %36 = vector.extract_strided_slice %2 {offsets = [96, 0], sizes = [16, 32], strides = [1, 1]} : vector<144x32xbf16> to vector<16x32xbf16>
    %cst_11 = arith.constant dense<0.000000e+00> : vector<64x32xf32>
    %37 = tpu.matmul %35, %36, %cst_11 {dimension_numbers = #tpu.dot_dimension_numbers<[1], [0], [0], [1], [0, 0, 1, 1], [], []>} : vector<64x16xbf16>, vector<16x32xbf16>, vector<64x32xf32> -> vector<64x32xf32>
    %38 = arith.addf %33, %37 : vector<64x32xf32>
    %39 = vector.extract_strided_slice %1 {offsets = [10, 0, 0], sizes = [8, 8, 16], strides = [1, 1, 1]} : vector<36x9x16xbf16> to vector<8x8x16xbf16>
    %40 = vector.shape_cast %39 : vector<8x8x16xbf16> to vector<64x16xbf16>
    %41 = vector.extract_strided_slice %2 {offsets = [112, 0], sizes = [16, 32], strides = [1, 1]} : vector<144x32xbf16> to vector<16x32xbf16>
    %cst_12 = arith.constant dense<0.000000e+00> : vector<64x32xf32>
    %42 = tpu.matmul %40, %41, %cst_12 {dimension_numbers = #tpu.dot_dimension_numbers<[1], [0], [0], [1], [0, 0, 1, 1], [], []>} : vector<64x16xbf16>, vector<16x32xbf16>, vector<64x32xf32> -> vector<64x32xf32>
    %43 = arith.addf %38, %42 : vector<64x32xf32>
    %44 = vector.extract_strided_slice %1 {offsets = [1, 1, 0], sizes = [8, 8, 16], strides = [1, 1, 1]} : vector<36x9x16xbf16> to vector<8x8x16xbf16>
    %45 = vector.shape_cast %44 : vector<8x8x16xbf16> to vector<64x16xbf16>
    %46 = vector.extract_strided_slice %2 {offsets = [128, 0], sizes = [16, 32], strides = [1, 1]} : vector<144x32xbf16> to vector<16x32xbf16>
    %cst_13 = arith.constant dense<0.000000e+00> : vector<64x32xf32>
    %47 = tpu.matmul %45, %46, %cst_13 {dimension_numbers = #tpu.dot_dimension_numbers<[1], [0], [0], [1], [0, 0, 1, 1], [], []>} : vector<64x16xbf16>, vector<16x32xbf16>, vector<64x32xf32> -> vector<64x32xf32>
    %48 = arith.addf %43, %47 : vector<64x32xf32>
    %49 = vector.shape_cast %48 : vector<64x32xf32> to vector<8x8x32xf32>
    %50 = arith.truncf %49 : vector<8x8x32xf32> to vector<8x8x32xbf16>
    %c0_14 = arith.constant 0 : index
    %c0_15 = arith.constant 0 : index
    %c0_16 = arith.constant 0 : index
    %c0_17 = arith.constant 0 : index
    %51 = vector.load %arg4[%c0_14, %c0_15, %c0_16, %c0_17] : memref<1x8x8x32xbf16, #tpu.memory_space<vmem>>, vector<1x8x8x32xbf16>
    %52 = vector.shape_cast %51 : vector<1x8x8x32xbf16> to vector<8x8x32xbf16>
    %53 = vector.shape_cast %50 : vector<8x8x32xbf16> to vector<1x8x8x32xbf16>
    tpu.vector_store %arg4[%c0_14, %c0_15, %c0_16, %c0_17], %53 {strides = array<i32>} : memref<1x8x8x32xbf16, #tpu.memory_space<vmem>>, vector<1x8x8x32xbf16>,
    %cst_18 = arith.constant dense<0.000000e+00> : vector<32xf32>
    %54 = vector.multi_reduction <add>, %48, %cst_18 [0] : vector<64x32xf32> to vector<32xf32>
    %55 = vector.shape_cast %54 : vector<32xf32> to vector<1x32xf32>
    %56 = arith.mulf %48, %48 : vector<64x32xf32>
    %cst_19 = arith.constant dense<0.000000e+00> : vector<32xf32>
    %57 = vector.multi_reduction <add>, %56, %cst_19 [0] : vector<64x32xf32> to vector<32xf32>
    %58 = vector.shape_cast %57 : vector<32xf32> to vector<1x32xf32>
    %59 = tpu.concatenate %55, %58 in 0 : vector<1x32xf32>, vector<1x32xf32> -> vector<2x32xf32>
    %c0_20 = arith.constant 0 : index
    %c0_21 = arith.constant 0 : index
    %c0_22 = arith.constant 0 : index
    %60 = vector.load %arg6[%c0_20, %c0_21, %c0_22] : memref<1x2x32xf32, #tpu.memory_space<vmem>>, vector<1x2x32xf32>
    %61 = vector.shape_cast %60 : vector<1x2x32xf32> to vector<2x32xf32>
    %62 = vector.shape_cast %59 : vector<2x32xf32> to vector<1x2x32xf32>
    tpu.vector_store %arg6[%c0_20, %c0_21, %c0_22], %62 {strides = array<i32>} : memref<1x2x32xf32, #tpu.memory_space<vmem>>, vector<1x2x32xf32>,
    %63 = vector.extract_strided_slice %1 {offsets = [27, 0, 0], sizes = [8, 8, 16], strides = [1, 1, 1]} : vector<36x9x16xbf16> to vector<8x8x16xbf16>
    %64 = vector.shape_cast %63 : vector<8x8x16xbf16> to vector<64x16xbf16>
    %c0_23 = arith.constant 0 : index
    %c0_24 = arith.constant 0 : index
    %65 = vector.load %arg3[%c0_23, %c0_24] : memref<16x32xbf16, #tpu.memory_space<vmem>>, vector<16x32xbf16>
    %cst_25 = arith.constant dense<0.000000e+00> : vector<64x32xf32>
    %66 = tpu.matmul %64, %65, %cst_25 {dimension_numbers = #tpu.dot_dimension_numbers<[1], [0], [0], [1], [0, 0, 1, 1], [], []>} : vector<64x16xbf16>, vector<16x32xbf16>, vector<64x32xf32> -> vector<64x32xf32>
    %67 = arith.truncf %66 : vector<64x32xf32> to vector<64x32xbf16>
    %c0_26 = arith.constant 0 : index
    %c0_27 = arith.constant 0 : index
    %c0_28 = arith.constant 0 : index
    %68 = vector.load %arg5[%c0_26, %c0_27, %c0_28] : memref<1x64x32xbf16, #tpu.memory_space<vmem>>, vector<1x64x32xbf16>
    %69 = vector.shape_cast %68 : vector<1x64x32xbf16> to vector<64x32xbf16>
    %70 = vector.shape_cast %67 : vector<64x32xbf16> to vector<1x64x32xbf16>
    tpu.vector_store %arg5[%c0_26, %c0_27, %c0_28], %70 {strides = array<i32>} : memref<1x64x32xbf16, #tpu.memory_space<vmem>>, vector<1x64x32xbf16>,
    %cst_29 = arith.constant dense<0.000000e+00> : vector<32xf32>
    %71 = vector.multi_reduction <add>, %66, %cst_29 [0] : vector<64x32xf32> to vector<32xf32>
    %72 = vector.shape_cast %71 : vector<32xf32> to vector<1x32xf32>
    %73 = arith.mulf %66, %66 : vector<64x32xf32>
    %cst_30 = arith.constant dense<0.000000e+00> : vector<32xf32>
    %74 = vector.multi_reduction <add>, %73, %cst_30 [0] : vector<64x32xf32> to vector<32xf32>
    %75 = vector.shape_cast %74 : vector<32xf32> to vector<1x32xf32>
    %76 = tpu.concatenate %72, %75 in 0 : vector<1x32xf32>, vector<1x32xf32> -> vector<2x32xf32>
    %c0_31 = arith.constant 0 : index
    %c0_32 = arith.constant 0 : index
    %c0_33 = arith.constant 0 : index
    %77 = vector.load %arg7[%c0_31, %c0_32, %c0_33] : memref<1x2x32xf32, #tpu.memory_space<vmem>>, vector<1x2x32xf32>
    %78 = vector.shape_cast %77 : vector<1x2x32xf32> to vector<2x32xf32>
    %79 = vector.shape_cast %76 : vector<2x32xf32> to vector<1x2x32xf32>
    tpu.vector_store %arg7[%c0_31, %c0_32, %c0_33], %79 {strides = array<i32>} : memref<1x2x32xf32, #tpu.memory_space<vmem>>, vector<1x2x32xf32>,
    return
  }
  func.func @transform_0(%arg0: i32) -> (i32, i32, i32, i32) {
    %c0_i32 = arith.constant 0 : i32
    %c0_i32_0 = arith.constant 0 : i32
    %c0_i32_1 = arith.constant 0 : i32
    %c0_i32_2 = arith.constant 0 : i32
    return %arg0, %c0_i32, %c0_i32_0, %c0_i32_1 : i32, i32, i32, i32
  }
  func.func @transform_1(%arg0: i32) -> (i32, i32) {
    %c0_i32 = arith.constant 0 : i32
    %c0_i32_0 = arith.constant 0 : i32
    %c0_i32_1 = arith.constant 0 : i32
    return %c0_i32, %c0_i32_0 : i32, i32
  }
  func.func @transform_2(%arg0: i32) -> (i32, i32) {
    %c0_i32 = arith.constant 0 : i32
    %c0_i32_0 = arith.constant 0 : i32
    %c0_i32_1 = arith.constant 0 : i32
    return %c0_i32, %c0_i32_0 : i32, i32
  }
  func.func @transform_3(%arg0: i32) -> (i32, i32, i32, i32) {
    %c0_i32 = arith.constant 0 : i32
    %c0_i32_0 = arith.constant 0 : i32
    %c0_i32_1 = arith.constant 0 : i32
    %c0_i32_2 = arith.constant 0 : i32
    return %arg0, %c0_i32, %c0_i32_0, %c0_i32_1 : i32, i32, i32, i32
  }
  func.func @transform_4(%arg0: i32) -> (i32, i32, i32) {
    %c0_i32 = arith.constant 0 : i32
    %c0_i32_0 = arith.constant 0 : i32
    %c0_i32_1 = arith.constant 0 : i32
    return %arg0, %c0_i32, %c0_i32_0 : i32, i32, i32
  }
  func.func @transform_5(%arg0: i32) -> (i32, i32, i32) {
    %c0_i32 = arith.constant 0 : i32
    %c0_i32_0 = arith.constant 0 : i32
    %c0_i32_1 = arith.constant 0 : i32
    return %arg0, %c0_i32, %c0_i32_0 : i32, i32, i32
  }
  func.func @transform_6(%arg0: i32) -> (i32, i32, i32) {
    %c0_i32 = arith.constant 0 : i32
    %c0_i32_0 = arith.constant 0 : i32
    %c0_i32_1 = arith.constant 0 : i32
    return %arg0, %c0_i32, %c0_i32_0 : i32, i32, i32
  }
}

module attributes {stable_mosaic.version = 11 : i64} {
  func.func @conv2_kernel(%arg0: i32, %arg1: memref<1x8x8x32xbf16, #tpu.memory_space<vmem>>, %arg2: memref<1x32xf32, #tpu.memory_space<vmem>>, %arg3: memref<1x32xf32, #tpu.memory_space<vmem>>, %arg4: memref<288x32xbf16, #tpu.memory_space<vmem>>, %arg5: memref<1x64x32xbf16, #tpu.memory_space<vmem>>, %arg6: memref<1x2x32xf32, #tpu.memory_space<vmem>>, %arg7: memref<10x10x32xf32, #tpu.memory_space<vmem>>) attributes {dimension_semantics = [#tpu.dimension_semantics<parallel>], iteration_bounds = array<i64: 2>, scalar_prefetch = 0 : i64, scratch_operands = 1 : i64, tpu.core_type = #tpu.core_type<tc>, window_params = [{transform_indices = @transform_0, window_bounds = array<i64: 1, 8, 8, 32>}, {pipeline_mode = #tpu.pipeline_mode<synchronous>, transform_indices = @transform_1, window_bounds = array<i64: 1, 32>}, {pipeline_mode = #tpu.pipeline_mode<synchronous>, transform_indices = @transform_2, window_bounds = array<i64: 1, 32>}, {pipeline_mode = #tpu.pipeline_mode<synchronous>, transform_indices = @transform_3, window_bounds = array<i64: 288, 32>}, {transform_indices = @transform_4, window_bounds = array<i64: 1, 64, 32>}, {transform_indices = @transform_5, window_bounds = array<i64: 1, 2, 32>}]} {
    %c0 = arith.constant 0 : index
    %c0_0 = arith.constant 0 : index
    %0 = vector.load %arg2[%c0, %c0_0] : memref<1x32xf32, #tpu.memory_space<vmem>>, vector<1x32xf32>
    %1 = vector.shape_cast %0 : vector<1x32xf32> to vector<1x1x32xf32>
    %c0_1 = arith.constant 0 : index
    %c0_2 = arith.constant 0 : index
    %2 = vector.load %arg3[%c0_1, %c0_2] : memref<1x32xf32, #tpu.memory_space<vmem>>, vector<1x32xf32>
    %3 = vector.shape_cast %2 : vector<1x32xf32> to vector<1x1x32xf32>
    %c0_3 = arith.constant 0 : index
    %c0_4 = arith.constant 0 : index
    %c0_5 = arith.constant 0 : index
    %c0_6 = arith.constant 0 : index
    %4 = vector.load %arg1[%c0_3, %c0_4, %c0_5, %c0_6] : memref<1x8x8x32xbf16, #tpu.memory_space<vmem>>, vector<1x8x8x32xbf16>
    %5 = vector.shape_cast %4 : vector<1x8x8x32xbf16> to vector<8x8x32xbf16>
    %6 = arith.extf %5 : vector<8x8x32xbf16> to vector<8x8x32xf32>
    %7 = vector.broadcast %1 : vector<1x1x32xf32> to vector<8x8x32xf32>
    %8 = arith.mulf %6, %7 : vector<8x8x32xf32>
    %9 = vector.broadcast %3 : vector<1x1x32xf32> to vector<8x8x32xf32>
    %10 = arith.addf %8, %9 : vector<8x8x32xf32>
    %cst = arith.constant 0.000000e+00 : f32
    %11 = vector.broadcast %cst : f32 to vector<8x8x32xf32>
    %12 = arith.maximumf %10, %11 : vector<8x8x32xf32>
    %cst_7 = arith.constant 0.000000e+00 : f32
    %13 = vector.broadcast %cst_7 : f32 to vector<10x10x32xf32>
    %c0_8 = arith.constant 0 : index
    %c0_9 = arith.constant 0 : index
    %c0_10 = arith.constant 0 : index
    %14 = vector.load %arg7[%c0_8, %c0_9, %c0_10] : memref<10x10x32xf32, #tpu.memory_space<vmem>>, vector<10x10x32xf32>
    tpu.vector_store %arg7[%c0_8, %c0_9, %c0_10], %13 {strides = array<i32>} : memref<10x10x32xf32, #tpu.memory_space<vmem>>, vector<10x10x32xf32>,
    %c1 = arith.constant 1 : index
    %c1_11 = arith.constant 1 : index
    %c0_12 = arith.constant 0 : index
    %15 = vector.load %arg7[%c1, %c1_11, %c0_12] : memref<10x10x32xf32, #tpu.memory_space<vmem>>, vector<8x8x32xf32>
    tpu.vector_store %arg7[%c1, %c1_11, %c0_12], %12 {strides = array<i32>} : memref<10x10x32xf32, #tpu.memory_space<vmem>>, vector<8x8x32xf32>,
    %c0_13 = arith.constant 0 : index
    %c0_14 = arith.constant 0 : index
    %16 = vector.load %arg4[%c0_13, %c0_14] : memref<288x32xbf16, #tpu.memory_space<vmem>>, vector<288x32xbf16>
    %cst_15 = arith.constant 0.000000e+00 : f32
    %17 = vector.broadcast %cst_15 : f32 to vector<64x32xf32>
    %c0_16 = arith.constant 0 : index
    %c0_17 = arith.constant 0 : index
    %c0_18 = arith.constant 0 : index
    %18 = vector.load %arg7[%c0_16, %c0_17, %c0_18] : memref<10x10x32xf32, #tpu.memory_space<vmem>>, vector<8x8x32xf32>
    %19 = arith.truncf %18 : vector<8x8x32xf32> to vector<8x8x32xbf16>
    %20 = vector.shape_cast %19 : vector<8x8x32xbf16> to vector<64x32xbf16>
    %21 = vector.extract_strided_slice %16 {offsets = [0, 0], sizes = [32, 32], strides = [1, 1]} : vector<288x32xbf16> to vector<32x32xbf16>
    %cst_19 = arith.constant dense<0.000000e+00> : vector<64x32xf32>
    %22 = tpu.matmul %20, %21, %cst_19 {dimension_numbers = #tpu.dot_dimension_numbers<[1], [0], [0], [1], [0, 0, 1, 1], [], []>} : vector<64x32xbf16>, vector<32x32xbf16>, vector<64x32xf32> -> vector<64x32xf32>
    %23 = arith.addf %17, %22 : vector<64x32xf32>
    %c0_20 = arith.constant 0 : index
    %c1_21 = arith.constant 1 : index
    %c0_22 = arith.constant 0 : index
    %24 = vector.load %arg7[%c0_20, %c1_21, %c0_22] : memref<10x10x32xf32, #tpu.memory_space<vmem>>, vector<8x8x32xf32>
    %25 = arith.truncf %24 : vector<8x8x32xf32> to vector<8x8x32xbf16>
    %26 = vector.shape_cast %25 : vector<8x8x32xbf16> to vector<64x32xbf16>
    %27 = vector.extract_strided_slice %16 {offsets = [32, 0], sizes = [32, 32], strides = [1, 1]} : vector<288x32xbf16> to vector<32x32xbf16>
    %cst_23 = arith.constant dense<0.000000e+00> : vector<64x32xf32>
    %28 = tpu.matmul %26, %27, %cst_23 {dimension_numbers = #tpu.dot_dimension_numbers<[1], [0], [0], [1], [0, 0, 1, 1], [], []>} : vector<64x32xbf16>, vector<32x32xbf16>, vector<64x32xf32> -> vector<64x32xf32>
    %29 = arith.addf %23, %28 : vector<64x32xf32>
    %c0_24 = arith.constant 0 : index
    %c2 = arith.constant 2 : index
    %c0_25 = arith.constant 0 : index
    %30 = vector.load %arg7[%c0_24, %c2, %c0_25] : memref<10x10x32xf32, #tpu.memory_space<vmem>>, vector<8x8x32xf32>
    %31 = arith.truncf %30 : vector<8x8x32xf32> to vector<8x8x32xbf16>
    %32 = vector.shape_cast %31 : vector<8x8x32xbf16> to vector<64x32xbf16>
    %33 = vector.extract_strided_slice %16 {offsets = [64, 0], sizes = [32, 32], strides = [1, 1]} : vector<288x32xbf16> to vector<32x32xbf16>
    %cst_26 = arith.constant dense<0.000000e+00> : vector<64x32xf32>
    %34 = tpu.matmul %32, %33, %cst_26 {dimension_numbers = #tpu.dot_dimension_numbers<[1], [0], [0], [1], [0, 0, 1, 1], [], []>} : vector<64x32xbf16>, vector<32x32xbf16>, vector<64x32xf32> -> vector<64x32xf32>
    %35 = arith.addf %29, %34 : vector<64x32xf32>
    %c1_27 = arith.constant 1 : index
    %c0_28 = arith.constant 0 : index
    %c0_29 = arith.constant 0 : index
    %36 = vector.load %arg7[%c1_27, %c0_28, %c0_29] : memref<10x10x32xf32, #tpu.memory_space<vmem>>, vector<8x8x32xf32>
    %37 = arith.truncf %36 : vector<8x8x32xf32> to vector<8x8x32xbf16>
    %38 = vector.shape_cast %37 : vector<8x8x32xbf16> to vector<64x32xbf16>
    %39 = vector.extract_strided_slice %16 {offsets = [96, 0], sizes = [32, 32], strides = [1, 1]} : vector<288x32xbf16> to vector<32x32xbf16>
    %cst_30 = arith.constant dense<0.000000e+00> : vector<64x32xf32>
    %40 = tpu.matmul %38, %39, %cst_30 {dimension_numbers = #tpu.dot_dimension_numbers<[1], [0], [0], [1], [0, 0, 1, 1], [], []>} : vector<64x32xbf16>, vector<32x32xbf16>, vector<64x32xf32> -> vector<64x32xf32>
    %41 = arith.addf %35, %40 : vector<64x32xf32>
    %c1_31 = arith.constant 1 : index
    %c1_32 = arith.constant 1 : index
    %c0_33 = arith.constant 0 : index
    %42 = vector.load %arg7[%c1_31, %c1_32, %c0_33] : memref<10x10x32xf32, #tpu.memory_space<vmem>>, vector<8x8x32xf32>
    %43 = arith.truncf %42 : vector<8x8x32xf32> to vector<8x8x32xbf16>
    %44 = vector.shape_cast %43 : vector<8x8x32xbf16> to vector<64x32xbf16>
    %45 = vector.extract_strided_slice %16 {offsets = [128, 0], sizes = [32, 32], strides = [1, 1]} : vector<288x32xbf16> to vector<32x32xbf16>
    %cst_34 = arith.constant dense<0.000000e+00> : vector<64x32xf32>
    %46 = tpu.matmul %44, %45, %cst_34 {dimension_numbers = #tpu.dot_dimension_numbers<[1], [0], [0], [1], [0, 0, 1, 1], [], []>} : vector<64x32xbf16>, vector<32x32xbf16>, vector<64x32xf32> -> vector<64x32xf32>
    %47 = arith.addf %41, %46 : vector<64x32xf32>
    %c1_35 = arith.constant 1 : index
    %c2_36 = arith.constant 2 : index
    %c0_37 = arith.constant 0 : index
    %48 = vector.load %arg7[%c1_35, %c2_36, %c0_37] : memref<10x10x32xf32, #tpu.memory_space<vmem>>, vector<8x8x32xf32>
    %49 = arith.truncf %48 : vector<8x8x32xf32> to vector<8x8x32xbf16>
    %50 = vector.shape_cast %49 : vector<8x8x32xbf16> to vector<64x32xbf16>
    %51 = vector.extract_strided_slice %16 {offsets = [160, 0], sizes = [32, 32], strides = [1, 1]} : vector<288x32xbf16> to vector<32x32xbf16>
    %cst_38 = arith.constant dense<0.000000e+00> : vector<64x32xf32>
    %52 = tpu.matmul %50, %51, %cst_38 {dimension_numbers = #tpu.dot_dimension_numbers<[1], [0], [0], [1], [0, 0, 1, 1], [], []>} : vector<64x32xbf16>, vector<32x32xbf16>, vector<64x32xf32> -> vector<64x32xf32>
    %53 = arith.addf %47, %52 : vector<64x32xf32>
    %c2_39 = arith.constant 2 : index
    %c0_40 = arith.constant 0 : index
    %c0_41 = arith.constant 0 : index
    %54 = vector.load %arg7[%c2_39, %c0_40, %c0_41] : memref<10x10x32xf32, #tpu.memory_space<vmem>>, vector<8x8x32xf32>
    %55 = arith.truncf %54 : vector<8x8x32xf32> to vector<8x8x32xbf16>
    %56 = vector.shape_cast %55 : vector<8x8x32xbf16> to vector<64x32xbf16>
    %57 = vector.extract_strided_slice %16 {offsets = [192, 0], sizes = [32, 32], strides = [1, 1]} : vector<288x32xbf16> to vector<32x32xbf16>
    %cst_42 = arith.constant dense<0.000000e+00> : vector<64x32xf32>
    %58 = tpu.matmul %56, %57, %cst_42 {dimension_numbers = #tpu.dot_dimension_numbers<[1], [0], [0], [1], [0, 0, 1, 1], [], []>} : vector<64x32xbf16>, vector<32x32xbf16>, vector<64x32xf32> -> vector<64x32xf32>
    %59 = arith.addf %53, %58 : vector<64x32xf32>
    %c2_43 = arith.constant 2 : index
    %c1_44 = arith.constant 1 : index
    %c0_45 = arith.constant 0 : index
    %60 = vector.load %arg7[%c2_43, %c1_44, %c0_45] : memref<10x10x32xf32, #tpu.memory_space<vmem>>, vector<8x8x32xf32>
    %61 = arith.truncf %60 : vector<8x8x32xf32> to vector<8x8x32xbf16>
    %62 = vector.shape_cast %61 : vector<8x8x32xbf16> to vector<64x32xbf16>
    %63 = vector.extract_strided_slice %16 {offsets = [224, 0], sizes = [32, 32], strides = [1, 1]} : vector<288x32xbf16> to vector<32x32xbf16>
    %cst_46 = arith.constant dense<0.000000e+00> : vector<64x32xf32>
    %64 = tpu.matmul %62, %63, %cst_46 {dimension_numbers = #tpu.dot_dimension_numbers<[1], [0], [0], [1], [0, 0, 1, 1], [], []>} : vector<64x32xbf16>, vector<32x32xbf16>, vector<64x32xf32> -> vector<64x32xf32>
    %65 = arith.addf %59, %64 : vector<64x32xf32>
    %c2_47 = arith.constant 2 : index
    %c2_48 = arith.constant 2 : index
    %c0_49 = arith.constant 0 : index
    %66 = vector.load %arg7[%c2_47, %c2_48, %c0_49] : memref<10x10x32xf32, #tpu.memory_space<vmem>>, vector<8x8x32xf32>
    %67 = arith.truncf %66 : vector<8x8x32xf32> to vector<8x8x32xbf16>
    %68 = vector.shape_cast %67 : vector<8x8x32xbf16> to vector<64x32xbf16>
    %69 = vector.extract_strided_slice %16 {offsets = [256, 0], sizes = [32, 32], strides = [1, 1]} : vector<288x32xbf16> to vector<32x32xbf16>
    %cst_50 = arith.constant dense<0.000000e+00> : vector<64x32xf32>
    %70 = tpu.matmul %68, %69, %cst_50 {dimension_numbers = #tpu.dot_dimension_numbers<[1], [0], [0], [1], [0, 0, 1, 1], [], []>} : vector<64x32xbf16>, vector<32x32xbf16>, vector<64x32xf32> -> vector<64x32xf32>
    %71 = arith.addf %65, %70 : vector<64x32xf32>
    %72 = arith.truncf %71 : vector<64x32xf32> to vector<64x32xbf16>
    %c0_51 = arith.constant 0 : index
    %c0_52 = arith.constant 0 : index
    %c0_53 = arith.constant 0 : index
    %73 = vector.load %arg5[%c0_51, %c0_52, %c0_53] : memref<1x64x32xbf16, #tpu.memory_space<vmem>>, vector<1x64x32xbf16>
    %74 = vector.shape_cast %73 : vector<1x64x32xbf16> to vector<64x32xbf16>
    %75 = vector.shape_cast %72 : vector<64x32xbf16> to vector<1x64x32xbf16>
    tpu.vector_store %arg5[%c0_51, %c0_52, %c0_53], %75 {strides = array<i32>} : memref<1x64x32xbf16, #tpu.memory_space<vmem>>, vector<1x64x32xbf16>,
    %cst_54 = arith.constant dense<0.000000e+00> : vector<32xf32>
    %76 = vector.multi_reduction <add>, %71, %cst_54 [0] : vector<64x32xf32> to vector<32xf32>
    %77 = vector.shape_cast %76 : vector<32xf32> to vector<1x32xf32>
    %78 = arith.mulf %71, %71 : vector<64x32xf32>
    %cst_55 = arith.constant dense<0.000000e+00> : vector<32xf32>
    %79 = vector.multi_reduction <add>, %78, %cst_55 [0] : vector<64x32xf32> to vector<32xf32>
    %80 = vector.shape_cast %79 : vector<32xf32> to vector<1x32xf32>
    %81 = tpu.concatenate %77, %80 in 0 : vector<1x32xf32>, vector<1x32xf32> -> vector<2x32xf32>
    %c0_56 = arith.constant 0 : index
    %c0_57 = arith.constant 0 : index
    %c0_58 = arith.constant 0 : index
    %82 = vector.load %arg6[%c0_56, %c0_57, %c0_58] : memref<1x2x32xf32, #tpu.memory_space<vmem>>, vector<1x2x32xf32>
    %83 = vector.shape_cast %82 : vector<1x2x32xf32> to vector<2x32xf32>
    %84 = vector.shape_cast %81 : vector<2x32xf32> to vector<1x2x32xf32>
    tpu.vector_store %arg6[%c0_56, %c0_57, %c0_58], %84 {strides = array<i32>} : memref<1x2x32xf32, #tpu.memory_space<vmem>>, vector<1x2x32xf32>,
    return
  }
  func.func @transform_0(%arg0: i32) -> (i32, i32, i32, i32) {
    %c0_i32 = arith.constant 0 : i32
    %c0_i32_0 = arith.constant 0 : i32
    %c0_i32_1 = arith.constant 0 : i32
    %c0_i32_2 = arith.constant 0 : i32
    return %arg0, %c0_i32, %c0_i32_0, %c0_i32_1 : i32, i32, i32, i32
  }
  func.func @transform_1(%arg0: i32) -> (i32, i32) {
    %c0_i32 = arith.constant 0 : i32
    %c0_i32_0 = arith.constant 0 : i32
    %c0_i32_1 = arith.constant 0 : i32
    return %c0_i32, %c0_i32_0 : i32, i32
  }
  func.func @transform_2(%arg0: i32) -> (i32, i32) {
    %c0_i32 = arith.constant 0 : i32
    %c0_i32_0 = arith.constant 0 : i32
    %c0_i32_1 = arith.constant 0 : i32
    return %c0_i32, %c0_i32_0 : i32, i32
  }
  func.func @transform_3(%arg0: i32) -> (i32, i32) {
    %c0_i32 = arith.constant 0 : i32
    %c0_i32_0 = arith.constant 0 : i32
    %c0_i32_1 = arith.constant 0 : i32
    return %c0_i32, %c0_i32_0 : i32, i32
  }
  func.func @transform_4(%arg0: i32) -> (i32, i32, i32) {
    %c0_i32 = arith.constant 0 : i32
    %c0_i32_0 = arith.constant 0 : i32
    %c0_i32_1 = arith.constant 0 : i32
    return %arg0, %c0_i32, %c0_i32_0 : i32, i32, i32
  }
  func.func @transform_5(%arg0: i32) -> (i32, i32, i32) {
    %c0_i32 = arith.constant 0 : i32
    %c0_i32_0 = arith.constant 0 : i32
    %c0_i32_1 = arith.constant 0 : i32
    return %arg0, %c0_i32, %c0_i32_0 : i32, i32, i32
  }
}

module attributes {stable_mosaic.version = 11 : i64} {
  func.func @se_residual_kernel(%arg0: i32, %arg1: memref<1x64x32xbf16, #tpu.memory_space<vmem>>, %arg2: memref<1x64x32xbf16, #tpu.memory_space<vmem>>, %arg3: memref<1x32xf32, #tpu.memory_space<vmem>>, %arg4: memref<1x32xf32, #tpu.memory_space<vmem>>, %arg5: memref<1x32xf32, #tpu.memory_space<vmem>>, %arg6: memref<1x32xf32, #tpu.memory_space<vmem>>, %arg7: memref<32x2xf32, #tpu.memory_space<vmem>>, %arg8: memref<1x2xf32, #tpu.memory_space<vmem>>, %arg9: memref<2x32xf32, #tpu.memory_space<vmem>>, %arg10: memref<1x32xf32, #tpu.memory_space<vmem>>, %arg11: memref<1x64x32xf32, #tpu.memory_space<vmem>>) attributes {dimension_semantics = [#tpu.dimension_semantics<parallel>], iteration_bounds = array<i64: 2>, scalar_prefetch = 0 : i64, scratch_operands = 0 : i64, tpu.core_type = #tpu.core_type<tc>, window_params = [{transform_indices = @transform_0, window_bounds = array<i64: 1, 64, 32>}, {transform_indices = @transform_1, window_bounds = array<i64: 1, 64, 32>}, {pipeline_mode = #tpu.pipeline_mode<synchronous>, transform_indices = @transform_2, window_bounds = array<i64: 1, 32>}, {pipeline_mode = #tpu.pipeline_mode<synchronous>, transform_indices = @transform_3, window_bounds = array<i64: 1, 32>}, {pipeline_mode = #tpu.pipeline_mode<synchronous>, transform_indices = @transform_4, window_bounds = array<i64: 1, 32>}, {pipeline_mode = #tpu.pipeline_mode<synchronous>, transform_indices = @transform_5, window_bounds = array<i64: 1, 32>}, {pipeline_mode = #tpu.pipeline_mode<synchronous>, transform_indices = @transform_6, window_bounds = array<i64: 32, 2>}, {pipeline_mode = #tpu.pipeline_mode<synchronous>, transform_indices = @transform_7, window_bounds = array<i64: 1, 2>}, {pipeline_mode = #tpu.pipeline_mode<synchronous>, transform_indices = @transform_8, window_bounds = array<i64: 2, 32>}, {pipeline_mode = #tpu.pipeline_mode<synchronous>, transform_indices = @transform_9, window_bounds = array<i64: 1, 32>}, {transform_indices = @transform_10, window_bounds = array<i64: 1, 64, 32>}]} {
    %c0 = arith.constant 0 : index
    %c0_0 = arith.constant 0 : index
    %c0_1 = arith.constant 0 : index
    %0 = vector.load %arg1[%c0, %c0_0, %c0_1] : memref<1x64x32xbf16, #tpu.memory_space<vmem>>, vector<1x64x32xbf16>
    %1 = vector.shape_cast %0 : vector<1x64x32xbf16> to vector<64x32xbf16>
    %2 = arith.extf %1 : vector<64x32xbf16> to vector<64x32xf32>
    %c0_2 = arith.constant 0 : index
    %c0_3 = arith.constant 0 : index
    %3 = vector.load %arg3[%c0_2, %c0_3] : memref<1x32xf32, #tpu.memory_space<vmem>>, vector<1x32xf32>
    %4 = vector.broadcast %3 : vector<1x32xf32> to vector<64x32xf32>
    %5 = arith.mulf %2, %4 : vector<64x32xf32>
    %c0_4 = arith.constant 0 : index
    %c0_5 = arith.constant 0 : index
    %6 = vector.load %arg4[%c0_4, %c0_5] : memref<1x32xf32, #tpu.memory_space<vmem>>, vector<1x32xf32>
    %7 = vector.broadcast %6 : vector<1x32xf32> to vector<64x32xf32>
    %8 = arith.addf %5, %7 : vector<64x32xf32>
    %c0_6 = arith.constant 0 : index
    %c0_7 = arith.constant 0 : index
    %c0_8 = arith.constant 0 : index
    %9 = vector.load %arg2[%c0_6, %c0_7, %c0_8] : memref<1x64x32xbf16, #tpu.memory_space<vmem>>, vector<1x64x32xbf16>
    %10 = vector.shape_cast %9 : vector<1x64x32xbf16> to vector<64x32xbf16>
    %11 = arith.extf %10 : vector<64x32xbf16> to vector<64x32xf32>
    %c0_9 = arith.constant 0 : index
    %c0_10 = arith.constant 0 : index
    %12 = vector.load %arg5[%c0_9, %c0_10] : memref<1x32xf32, #tpu.memory_space<vmem>>, vector<1x32xf32>
    %13 = vector.broadcast %12 : vector<1x32xf32> to vector<64x32xf32>
    %14 = arith.mulf %11, %13 : vector<64x32xf32>
    %c0_11 = arith.constant 0 : index
    %c0_12 = arith.constant 0 : index
    %15 = vector.load %arg6[%c0_11, %c0_12] : memref<1x32xf32, #tpu.memory_space<vmem>>, vector<1x32xf32>
    %16 = vector.broadcast %15 : vector<1x32xf32> to vector<64x32xf32>
    %17 = arith.addf %14, %16 : vector<64x32xf32>
    %cst = arith.constant dense<0.000000e+00> : vector<32xf32>
    %18 = vector.multi_reduction <add>, %8, %cst [0] : vector<64x32xf32> to vector<32xf32>
    %19 = vector.shape_cast %18 : vector<32xf32> to vector<1x32xf32>
    %cst_13 = arith.constant 6.400000e+01 : f32
    %20 = vector.broadcast %cst_13 : f32 to vector<1x32xf32>
    %21 = arith.divf %19, %20 : vector<1x32xf32>
    %c0_14 = arith.constant 0 : index
    %c0_15 = arith.constant 0 : index
    %22 = vector.load %arg7[%c0_14, %c0_15] : memref<32x2xf32, #tpu.memory_space<vmem>>, vector<32x2xf32>
    %cst_16 = arith.constant dense<0.000000e+00> : vector<1x2xf32>
    %23 = tpu.matmul %21, %22, %cst_16 {dimension_numbers = #tpu.dot_dimension_numbers<[1], [0], [0], [1], [0, 0, 1, 1], [], []>} : vector<1x32xf32>, vector<32x2xf32>, vector<1x2xf32> -> vector<1x2xf32>
    %c0_17 = arith.constant 0 : index
    %c0_18 = arith.constant 0 : index
    %24 = vector.load %arg8[%c0_17, %c0_18] : memref<1x2xf32, #tpu.memory_space<vmem>>, vector<1x2xf32>
    %25 = arith.addf %23, %24 : vector<1x2xf32>
    %cst_19 = arith.constant 0.000000e+00 : f32
    %26 = vector.broadcast %cst_19 : f32 to vector<1x2xf32>
    %27 = arith.maximumf %25, %26 : vector<1x2xf32>
    %c0_20 = arith.constant 0 : index
    %c0_21 = arith.constant 0 : index
    %28 = vector.load %arg9[%c0_20, %c0_21] : memref<2x32xf32, #tpu.memory_space<vmem>>, vector<2x32xf32>
    %cst_22 = arith.constant dense<0.000000e+00> : vector<1x32xf32>
    %29 = tpu.matmul %27, %28, %cst_22 {dimension_numbers = #tpu.dot_dimension_numbers<[1], [0], [0], [1], [0, 0, 1, 1], [], []>} : vector<1x2xf32>, vector<2x32xf32>, vector<1x32xf32> -> vector<1x32xf32>
    %c0_23 = arith.constant 0 : index
    %c0_24 = arith.constant 0 : index
    %30 = vector.load %arg10[%c0_23, %c0_24] : memref<1x32xf32, #tpu.memory_space<vmem>>, vector<1x32xf32>
    %31 = arith.addf %29, %30 : vector<1x32xf32>
    %32 = arith.negf %31 : vector<1x32xf32>
    %33 = math.exp %32 : vector<1x32xf32>
    %cst_25 = arith.constant 1.000000e+00 : f32
    %34 = vector.broadcast %cst_25 : f32 to vector<1x32xf32>
    %35 = arith.addf %34, %33 : vector<1x32xf32>
    %36 = arith.divf %34, %35 : vector<1x32xf32>
    %37 = vector.broadcast %36 : vector<1x32xf32> to vector<64x32xf32>
    %38 = arith.mulf %8, %37 : vector<64x32xf32>
    %39 = arith.addf %38, %17 : vector<64x32xf32>
    %cst_26 = arith.constant 0.000000e+00 : f32
    %40 = vector.broadcast %cst_26 : f32 to vector<64x32xf32>
    %41 = arith.maximumf %39, %40 : vector<64x32xf32>
    %c0_27 = arith.constant 0 : index
    %c0_28 = arith.constant 0 : index
    %c0_29 = arith.constant 0 : index
    %42 = vector.load %arg11[%c0_27, %c0_28, %c0_29] : memref<1x64x32xf32, #tpu.memory_space<vmem>>, vector<1x64x32xf32>
    %43 = vector.shape_cast %42 : vector<1x64x32xf32> to vector<64x32xf32>
    %44 = vector.shape_cast %41 : vector<64x32xf32> to vector<1x64x32xf32>
    tpu.vector_store %arg11[%c0_27, %c0_28, %c0_29], %44 {strides = array<i32>} : memref<1x64x32xf32, #tpu.memory_space<vmem>>, vector<1x64x32xf32>,
    return
  }
  func.func @transform_0(%arg0: i32) -> (i32, i32, i32) {
    %c0_i32 = arith.constant 0 : i32
    %c0_i32_0 = arith.constant 0 : i32
    %c0_i32_1 = arith.constant 0 : i32
    return %arg0, %c0_i32, %c0_i32_0 : i32, i32, i32
  }
  func.func @transform_1(%arg0: i32) -> (i32, i32, i32) {
    %c0_i32 = arith.constant 0 : i32
    %c0_i32_0 = arith.constant 0 : i32
    %c0_i32_1 = arith.constant 0 : i32
    return %arg0, %c0_i32, %c0_i32_0 : i32, i32, i32
  }
  func.func @transform_2(%arg0: i32) -> (i32, i32) {
    %c0_i32 = arith.constant 0 : i32
    %c0_i32_0 = arith.constant 0 : i32
    %c0_i32_1 = arith.constant 0 : i32
    return %c0_i32, %c0_i32_0 : i32, i32
  }
  func.func @transform_3(%arg0: i32) -> (i32, i32) {
    %c0_i32 = arith.constant 0 : i32
    %c0_i32_0 = arith.constant 0 : i32
    %c0_i32_1 = arith.constant 0 : i32
    return %c0_i32, %c0_i32_0 : i32, i32
  }
  func.func @transform_4(%arg0: i32) -> (i32, i32) {
    %c0_i32 = arith.constant 0 : i32
    %c0_i32_0 = arith.constant 0 : i32
    %c0_i32_1 = arith.constant 0 : i32
    return %c0_i32, %c0_i32_0 : i32, i32
  }
  func.func @transform_5(%arg0: i32) -> (i32, i32) {
    %c0_i32 = arith.constant 0 : i32
    %c0_i32_0 = arith.constant 0 : i32
    %c0_i32_1 = arith.constant 0 : i32
    return %c0_i32, %c0_i32_0 : i32, i32
  }
  func.func @transform_6(%arg0: i32) -> (i32, i32) {
    %c0_i32 = arith.constant 0 : i32
    %c0_i32_0 = arith.constant 0 : i32
    %c0_i32_1 = arith.constant 0 : i32
    return %c0_i32, %c0_i32_0 : i32, i32
  }
  func.func @transform_7(%arg0: i32) -> (i32, i32) {
    %c0_i32 = arith.constant 0 : i32
    %c0_i32_0 = arith.constant 0 : i32
    %c0_i32_1 = arith.constant 0 : i32
    return %c0_i32, %c0_i32_0 : i32, i32
  }
  func.func @transform_8(%arg0: i32) -> (i32, i32) {
    %c0_i32 = arith.constant 0 : i32
    %c0_i32_0 = arith.constant 0 : i32
    %c0_i32_1 = arith.constant 0 : i32
    return %c0_i32, %c0_i32_0 : i32, i32
  }
  func.func @transform_9(%arg0: i32) -> (i32, i32) {
    %c0_i32 = arith.constant 0 : i32
    %c0_i32_0 = arith.constant 0 : i32
    %c0_i32_1 = arith.constant 0 : i32
    return %c0_i32, %c0_i32_0 : i32, i32
  }
  func.func @transform_10(%arg0: i32) -> (i32, i32, i32) {
    %c0_i32 = arith.constant 0 : i32
    %c0_i32_0 = arith.constant 0 : i32
    %c0_i32_1 = arith.constant 0 : i32
    return %arg0, %c0_i32, %c0_i32_0 : i32, i32, i32
  }
}

</mosaic_0001>

<bundles_post_ra>
// kernel: residual_block_forward.3
= control target key start
LH: loop header
LB: loop body
LE: loop exit
PB: predicated region body
PF: predicated region fallthrough
CT: control target
= control target key end

     0   :  { %s2326_s21 = smov 0   ;;  %s2786_s0 = inlined_call_operand.vmem [shape: bf16[2,36,9,16], index: 0, kind: input, shape index: {}]   ;;  %s2787_s1 = inlined_call_operand.vmem [shape: bf16[144,32], index: 1, kind: input, shape index: {}]   ;;  %s2788_s2 = inlined_call_operand.vmem [shape: bf16[16,32], index: 2, kind: input, shape index: {}]   ;;  %s2789_s3 = inlined_call_operand.vmem [shape: bf16[2,8,8,32], index: 3, kind: output, shape index: {0}]   ;;  %s2790_s4 = inlined_call_operand.vmem [shape: bf16[2,64,32], index: 4, kind: output, shape index: {1}]   ;;  %s2791_s5 = inlined_call_operand.vmem [shape: f32[2,2,32], index: 5, kind: output, shape index: {2}]   ;;  %s2792_s6 = inlined_call_operand.vmem [shape: f32[2,2,32], index: 6, kind: output, shape index: {3}]  }
   0x1 LB: > { %s1908_s22 = sadd.s32 4294967295, %s2289_s21   ;;  %p1912_p0 = scmp.ge.s32.totalorder %s2289_s21, 1  ;;  %s2289_s21 = sphi %s2326_s21, %s17_s21  }
   0x2   : > { %p219_p1 = scmp.lt.s32.totalorder %s2289_s21, 3 }
   0x4   : > { %p220_p2 = pnand %p1912_p0, %p219_p1 }
   0x5   : > { %v2249_v0 = vld [vmem:[%s2787_s1 + $0x20] sm:$0xff] (!%p220_p2)   ;;  %p262_p3 = scmp.lt.s32.totalorder (!%p220_p2), %s1908_s22, 1  ;;  %v2250_v1 = vld [vmem:[%s2787_s1 + $0x8] sm:$0xff] (!%p220_p2)   ;;  %vm381_vm0 = vcmask (!%p220_p2), 130048   ;;  %v2371_v10 = vld [vmem:[%s2787_s1 + $0x30] sm:$0xff] (!%p220_p2)   ;;  %vm1529_vm4 = vcmask (!%p220_p2), 257024  }
   0x6   : > { %223 = sbr.rel (%p220_p2) target bundleno = 347 (0x15b), region = 32  ;;  %2116 = vmatprep.subr.bf16.mxu0 (!%p220_p2), %v2249_v0  ;;  %v2256_v2 = vld [vmem:[%s2787_s1 + $0x28] sm:$0xff] (!%p220_p2)   ;;  %2076 = vmatprep.subr.bf16.mxu1 (!%p220_p2), %v2250_v1  ;;  %v2258_v3 = vld [vmem:[%s2787_s1] sm:$0xff] (!%p220_p2)   ;;  %v2381_v13 = vld [vmem:[%s2787_s1 + $0x10] sm:$0xff] (!%p220_p2)   ;;  %vm562_vm1 = vsmask.f32 (!%p220_p2), 3328 }
   0x7   : > { %2117 = vmatpush3.bf16.msra.mxu0 (!%p220_p2), %v2249_v0  ;;  %2077 = vmatpush3.bf16.msra.mxu1 (!%p220_p2), %v2250_v1  ;;  %vm563_vm2 = vsmask.f32 (!%p220_p2), 7440  ;;  %vm1538_vm5 = vcmask (!%p220_p2), 261120   ;;  %vm1589_vm6 = vcmask (!%p220_p2), 1040384   ;;  %vm1591_vm7 = vcmask (!%p220_p2), 254976  }
   0x8   : > { %2126 = vmatprep.subr.bf16.mxu0 (!%p220_p2), %v2256_v2  ;;  %2086 = vmatprep.subr.bf16.mxu1 (!%p220_p2), %v2258_v3  ;;  %vm2463_vm3 = vmor (!%p220_p2), %vm562_vm1, %vm563_vm2 }
   0xd   : > { %s2800_s22 = smov (!%p262_p3, %s1908_s22), 1 }
   0xe   : > { %s2240_s7 = smul.u32 288, %s2800_s22  ;;  %s2016_s25 = sshll.u32 %s2800_s22, 5 }
   0xf   : > { %s2702_s28 = scalar_lea.vmem %s2790_s4, %s2016_s25  ;;  %s1918_s8 = sshll.u32 %s2800_s22, 1 }
  0x10   : > { %s2352_s10 = scalar_lea.vmem %s2786_s0, %s2240_s7  ;;  %s2707_s7 = scalar_lea.vmem %s2789_s3, %s2016_s25 }
  0x11   : > { %v304_v4 = vld [vmem:[%s2352_s10 + $0x48] sm:$0xf]  ;;  %v2356_v5 = vld [vmem:[%s2352_s10 + $0x50] sm:$0xf]  ;;  %v2359_v6 = vld [vmem:[%s2352_s10 + $0x58] sm:$0xf]  ;;  %s284_s11 = scalar_lea.vmem %s2792_s6, %s1918_s8  ;;  %s280_s14 = scalar_lea.vmem %s2791_s5, %s1918_s8 }
  0x12   : > { %v2362_v7 = vld [vmem:[%s2352_s10 + $0x60] sm:$0xf]  ;;  %v2365_v8 = vld [vmem:[%s2352_s10 + $0x68] sm:$0xf]  ;;  %v1920_v9 = vcombine.low %v304_v4, %v2356_v5  ;;  %v2388_v15 = vld [vmem:[%s2352_s10 + $0x70] sm:$0xf] }
  0x13   : > { %v1921_v11 = vcombine.low %v2359_v6, %v2362_v7  ;;  %v2376_v12 = vld [vmem:[%s2352_s10 + $0xd8] ss:$8 sps:$4 sm:$0xff]   ;;  %v2385_v14 = vld [vmem:[%s2352_s10 + $0xe8] ss:$8 sps:$4 sm:$0xff]   ;;  %v1922_v16 = vcombine.low %v2365_v8, %v2388_v15  ;;  %v314_v29 = vld [vmem:[%s2352_s10 + $0x94] sm:$0x1] }
  0x14   : > { %2078 = vmatprep.mubr.msk.bf16.mxu1 %vm381_vm0, %v1920_v9  ;;  %2118 = vmatprep.mubr.msk.bf16.mxu0 %vm381_vm0, %v2376_v12  ;;  %v2396_v17 = vld [vmem:[%s2352_s10 + $0xf8] ss:$8 sps:$4 sm:$0xff]   ;;  %v2411_v21 = vld [vmem:[%s2352_s10 + $0x108] ss:$8 sps:$4 sm:$0xff]   ;;  %v316_v33 = vld [vmem:[%s2352_s10 + $0x9c] sm:$0x1] }
  0x15   : > { %2079 = vmatmul.mubr.msk.bf16.vlgmr.msra.gmra.mrb[0].mxu1 %vm381_vm0, %v1921_v11  ;;  %2119 = vmatmul.mubr.msk.bf16.vlgmr.msra.gmra.mrb[0].mxu0 %vm381_vm0, %v2385_v14  ;;  %v2401_v18 = vld [vmem:[%s2352_s10 + $0x78] sm:$0xf]  ;;  %v2404_v19 = vld [vmem:[%s2352_s10 + $0x80] sm:$0xf]  ;;  %v2414_v22 = vld [vmem:[%s2352_s10 + $0x8] sm:$0xf] }
  0x16   : > { %2087 = vmatpush3.bf16.msra.mxu1 %v2258_v3  ;;  %2127 = vmatpush3.bf16.msra.mxu0 %v2256_v2  ;;  %v286_v20 = vld [vmem:[%s2352_s10] sm:$0xf]  ;;  %v2417_v25 = vld [vmem:[%s2352_s10 + $0x90] sm:$0xf]  ;;  %v1923_v26 = vcombine.low %v2401_v18, %v2404_v19  ;;  %v580_v28 = vshrl.u32 %v2414_v22, 16  ;;  %v583_v32 = vshll.u32 %v2414_v22, 16 }
  0x17   : > { %2082 = vmatprep.mubr.msk.bf16.mxu1 %vm381_vm0, %v1922_v16  ;;  %2122 = vmatprep.mubr.msk.bf16.mxu0 %vm381_vm0, %v2396_v17  ;;  %v566_v23 = vshrl.u32 %v286_v20, 16  ;;  %v569_v24 = vshll.u32 %v286_v20, 16  ;;  %v1929_v27 = vcombine.low %v286_v20, %v2414_v22  ;;  %v2426_v30 = vld [vmem:[%s2352_s10 + $0x98] sm:$0xf]  ;;  %v1003_v34 = vshrl.u32 %v2417_v25, 16 }
  0x18   : > { %2136 = vmatprep.subr.bf16.mxu0 %v2371_v10  ;;  %2096 = vmatprep.subr.bf16.mxu1 %v2381_v13  ;;  %v1006_v35 = vshll.u32 %v2417_v25, 16  ;;  %v1012_v36 = vshll.u32 %v314_v29, 16  ;;  %v1017_v37 = vshrl.u32 %v2426_v30, 16  ;;  %v1020_v38 = vshll.u32 %v2426_v30, 16  ;;  %v2438_v40 = vld [vmem:[%s2352_s10 + $0x10] sm:$0xf] }
  0x19   : > { %v2429_v31 = vrot.slane %v566_v23, 4  ;;  %v1026_v39 = vshll.u32 %v316_v33, 16  ;;  %v2440_v41 = vrot.slane %v569_v24, 5  ;;  %v1005_v42 = vrot.slane %v1003_v34, 4  ;;  %v2443_v44 = vld [vmem:[%s2352_s10 + $0x18] sm:$0xf] }
  0x1a   : > { %v1008_v43 = vrot.slane %v1006_v35, 5  ;;  %v594_v45 = vshrl.u32 %v2438_v40, 16  ;;  %v1014_v46 = vrot.slane %v1012_v36, 5  ;;  %v1019_v47 = vrot.slane %v1017_v37, 4  ;;  %v2449_v50 = vld [vmem:[%s2352_s10 + $0xa0] sm:$0xf] }
  0x1b   : > { %v1022_v48 = vrot.slane %v1020_v38, 5  ;;  %v597_v49 = vshll.u32 %v2438_v40, 16  ;;  %v1028_v52 = vrot.slane %v1026_v39, 5  ;;  %v1930_v53 = vcombine.low %v2438_v40, %v2443_v44  ;;  %v318_v55 = vld [vmem:[%s2352_s10 + $0xa4] sm:$0x1]  ;;  %v2495_v39 = vld [vmem:[%s2787_s1 + $0x18] sm:$0xff]  }
  0x1c   : > { %v1009_v51 = vor.u32 %v1008_v43, %v1005_v42  ;;  %v608_v54 = vshrl.u32 %v2443_v44, 16  ;;  %v2459_v56 = vld [vmem:[%s2352_s10 + $0xa8] sm:$0xf]  ;;  %v320_v59 = vld [vmem:[%s2352_s10 + $0xac] sm:$0x1]  ;;  %v1031_v60 = vshrl.u32 %v2449_v50, 16 }
  0x1d   : > { %2083 = vmatmul.mubr.msk.bf16.gmra.mrb[4].mxu1 %vm381_vm0, %v1923_v26  ;;  %2123 = vmatmul.mubr.msk.bf16.gmra.mrb[4].mxu0 %vm381_vm0, %v2411_v21  ;;  %v1023_v58 = vor.u32 %v1022_v48, %v1019_v47  ;;  %v1034_v61 = vshll.u32 %v2449_v50, 16  ;;  %v1040_v62 = vshll.u32 %v318_v55, 16  ;;  %v1045_v0 = vshrl.u32 %v2459_v56, 16  ;;  %v2473_v3 = vld [vmem:[%s2352_s10 + $0x20] sm:$0xf] }
  0x1e   : > { %2088 = vmatprep.mubr.msk.bf16.mxu1 %vm381_vm0, %v1929_v27  ;;  %v1010_v63 = vrot.slane %v1009_v51, 4  ;;  %v1048_v1 = vshll.u32 %v2459_v56, 16  ;;  %v1054_v2 = vshll.u32 %v320_v59, 16  ;;  %v611_v9 = vshll.u32 %v2443_v44, 16  ;;  %v2477_v20 = vld [vmem:[%s2352_s10 + $0x28] sm:$0xf] }
  0x1f   : > { %v1024_v4 = vrot.slane %v1023_v58, 4  ;;  %v1033_v11 = vrot.slane %v1031_v60, 4  ;;  %v1036_v16 = vrot.slane %v1034_v61, 5  ;;  %v1042_v24 = vrot.slane %v1040_v62, 5  ;;  %v2482_v29 = vld [vmem:[%s2352_s10 + $0xb0] sm:$0xf] }
  0x20   : > { %v1015_v23 = vsel %vm2463_vm3, %v1010_v63, %v1014_v46  ;;  %v1047_v26 = vrot.slane %v1045_v0, 4  ;;  %v1050_v27 = vrot.slane %v1048_v1, 5  ;;  %v1056_v35 = vrot.slane %v1054_v2, 5  ;;  %v322_v37 = vld [vmem:[%s2352_s10 + $0xb4] sm:$0x1] }
  0x21   : > { %v1029_v33 = vsel %vm2463_vm3, %v1024_v4, %v1028_v52  ;;  %v1037_v34 = vor.u32 %v1036_v16, %v1033_v11  ;;  %v1931_v36 = vcombine.low %v2473_v3, %v2477_v20  ;;  %v2490_v38 = vld [vmem:[%s2352_s10 + $0xb8] sm:$0xf]  ;;  %v622_v46 = vshrl.u32 %v2473_v3, 16  ;;  %v324_v48 = vld [vmem:[%s2352_s10 + $0xbc] sm:$0x1] }
  0x22   : > { %v1965_v42 = vcombine.low %v1015_v23, %v1029_v33  ;;  %v1051_v43 = vor.u32 %v1050_v27, %v1047_v26  ;;  %v625_v47 = vshll.u32 %v2473_v3, 16  ;;  %v636_v52 = vshrl.u32 %v2477_v20, 16  ;;  %v2505_v59 = vld [vmem:[%s2352_s10 + $0x30] sm:$0xf]  ;;  %v2512_v63 = vld [vmem:[%s2352_s10 + $0x38] sm:$0xf] }
  0x23   : > { %v1038_v51 = vrot.slane %v1037_v34, 4  ;;  %v639_v55 = vshll.u32 %v2477_v20, 16  ;;  %v1059_v58 = vshrl.u32 %v2482_v29, 16  ;;  %v1062_v61 = vshll.u32 %v2482_v29, 16  ;;  %v2529_v26 = vld [vmem:[%s2787_s1 + $0x38] sm:$0xff]  }
  0x24   : > { %2128 = vmatprep.mubr.msk.bf16.mxu0 %vm381_vm0, %v1965_v42  ;;  %v1052_v60 = vrot.slane %v1051_v43, 4  ;;  %v1068_v62 = vshll.u32 %v322_v37, 16  ;;  %v1076_v2 = vshll.u32 %v2490_v38, 16  ;;  %v1082_v4 = vshll.u32 %v324_v48, 16  ;;  %v2535_v37 = vld [vmem:[%s2352_s10 + $0xc8] sm:$0xf] }
  0x25   : > { %2089 = vmatmul.mubr.msk.bf16.vlgmr.msra.gmra.mrb[0].mxu1 %vm381_vm0, %v1930_v53  ;;  %v1073_v53 = vshrl.u32 %v2490_v38, 16  ;;  %v1043_v0 = vsel %vm2463_vm3, %v1038_v51, %v1042_v24  ;;  %v1061_v1 = vrot.slane %v1059_v58, 4  ;;  %v1064_v16 = vrot.slane %v1062_v61, 5  ;;  %v2524_v24 = vld [vmem:[%s2352_s10 + $0xc0] sm:$0xf] }
  0x26   : > { %2097 = vmatpush3.bf16.msra.mxu1 %v2381_v13  ;;  %2092 = vmatprep.mubr.msk.bf16.mxu1 %vm381_vm0, %v1931_v36  ;;  %v1057_v13 = vsel %vm2463_vm3, %v1052_v60, %v1056_v35  ;;  %v1070_v33 = vrot.slane %v1068_v62, 5  ;;  %v1078_v34 = vrot.slane %v1076_v2, 5  ;;  %v1932_v36 = vcombine.low %v2505_v59, %v2512_v63  ;;  %v326_v35 = vld [vmem:[%s2352_s10 + $0xc4] sm:$0x1]  ;;  %v328_v58 = vld [vmem:[%s2352_s10 + $0xcc] sm:$0x1] }
  0x27   : > { %2106 = vmatprep.subr.bf16.mxu1 %v2495_v39  ;;  %v1075_v23 = vrot.slane %v1073_v53, 4  ;;  %v1966_v27 = vcombine.low %v1043_v0, %v1057_v13  ;;  %v1065_v42 = vor.u32 %v1064_v16, %v1061_v1  ;;  %v1084_v43 = vrot.slane %v1082_v4, 5  ;;  %v289_v61 = vld [vmem:[%s2352_s10 + $0xc] sm:$0x1]  ;;  %v312_v57 = vld [vmem:[%s2352_s10 + $0x88] sm:$0xf] }
  0x28   : > { %v1087_v62 = vshrl.u32 %v2524_v24, 16  ;;  %v1090_v53 = vshll.u32 %v2524_v24, 16  ;;  %v1096_v1 = vshll.u32 %v326_v35, 16  ;;  %v1101_v2 = vshrl.u32 %v2535_v37, 16 }
  0x29   : > { %2129 = vmatmul.mubr.msk.bf16.vlgmr.msra.gmra.mrb[0].mxu0 %vm381_vm0, %v1966_v27  ;;  %v1079_v60 = vor.u32 %v1078_v34, %v1075_v23  ;;  %v1066_v0 = vrot.slane %v1065_v42, 4  ;;  %v1104_v4 = vshll.u32 %v2535_v37, 16  ;;  %v1110_v27 = vshll.u32 %v328_v58, 16  ;;  %v287_v34 = vld [vmem:[%s2352_s10 + $0x4] sm:$0x1] }
  0x2a   : > { %2137 = vmatpush3.bf16.msra.mxu0 %v2371_v10  ;;  %v1089_v16 = vrot.slane %v1087_v62, 4  ;;  %v1092_v23 = vrot.slane %v1090_v53, 5  ;;  %v1098_v10 = vrot.slane %v1096_v1, 5  ;;  %v1103_v42 = vrot.slane %v1101_v2, 4 }
  0x2b   : > { %v1080_v13 = vrot.slane %v1079_v60, 4  ;;  %2146 = vmatprep.subr.bf16.mxu0 %v2529_v26  ;;  %v1071_v11 = vsel %vm2463_vm3, %v1066_v0, %v1070_v33  ;;  %v1106_v35 = vrot.slane %v1104_v4, 5  ;;  %v572_v58 = vor.u32 %v2440_v41, %v2429_v31  ;;  %v293_v41 = vld [vmem:[%s2352_s10 + $0x1c] sm:$0x1] }
  0x2c   : > { %v1093_v60 = vor.u32 %v1092_v23, %v1089_v16  ;;  %v575_v48 = vshll.u32 %v287_v34, 16  ;;  %v582_v33 = vrot.slane %v580_v28, 4  ;;  %v585_v2 = vrot.slane %v583_v32, 5 }
  0x2d   : > { %2093 = vmatmul.mubr.msk.bf16.gmra.mrb[4].mxu1 %vm381_vm0, %v1932_v36  ;;  %v1085_v51 = vsel %vm2463_vm3, %v1080_v13, %v1084_v43  ;;  %v1112_v36 = vrot.slane %v1110_v27, 5  ;;  %v1107_v53 = vor.u32 %v1106_v35, %v1103_v42  ;;  %v573_v1 = vrot.slane %v572_v58, 4  ;;  %v291_v43 = vld [vmem:[%s2352_s10 + $0x14] sm:$0x1] }
  0x2e   : > { %v1967_v62 = vcombine.low %v1071_v11, %v1085_v51  ;;  %v1094_v0 = vrot.slane %v1093_v60, 4  ;;  %v589_v4 = vshll.u32 %v289_v61, 16  ;;  %v577_v16 = vrot.slane %v575_v48, 5  ;;  %v295_v61 = vld [vmem:[%s2352_s10 + $0x24] sm:$0x1] }
  0x2f   : > { %v1108_v13 = vrot.slane %v1107_v53, 4  ;;  %v1974_v31 = vcombine.low %v2414_v22, %v2438_v40  ;;  %v596_v11 = vrot.slane %v594_v45, 4  ;;  %v586_v51 = vor.u32 %v585_v2, %v582_v33  ;;  %v297_v53 = vld [vmem:[%s2352_s10 + $0x2c] sm:$0x1] }
  0x30   : > { %2132 = vmatprep.mubr.msk.bf16.mxu0 %vm381_vm0, %v1967_v62  ;;  %v1099_v28 = vsel %vm2463_vm3, %v1094_v0, %v1098_v10  ;;  %v591_v23 = vrot.slane %v589_v4, 5  ;;  %v599_v32 = vrot.slane %v597_v49, 5  ;;  %v578_v22 = vsel %vm2463_vm3, %v573_v1, %v577_v16  ;;  %v299_v1 = vld [vmem:[%s2352_s10 + $0x34] sm:$0x1] }
  0x31   : > { %v1113_v27 = vsel %vm2463_vm3, %v1108_v13, %v1112_v36  ;;  %v603_v48 = vshll.u32 %v291_v43, 16  ;;  %v610_v45 = vrot.slane %v608_v54, 4  ;;  %v587_v42 = vrot.slane %v586_v51, 4 }
  0x32   : > { %v1968_v34 = vcombine.low %v1099_v28, %v1113_v27  ;;  %v600_v10 = vor.u32 %v599_v32, %v596_v11  ;;  %v613_v35 = vrot.slane %v611_v9, 5  ;;  %v617_v49 = vshll.u32 %v293_v41, 16 }
  0x33   : > { %v605_v40 = vrot.slane %v603_v48, 5  ;;  %v624_v60 = vrot.slane %v622_v46, 4  ;;  %v627_v36 = vrot.slane %v625_v47, 5  ;;  %v2588_v54 = vsel %vm2463_vm3, %v587_v42, %v591_v23  ;;  %v301_v23 = vld [vmem:[%s2352_s10 + $0x3c] sm:$0x1] }
  0x34   : > { %2133 = vmatmul.mubr.msk.bf16.gmra.mrb[4].mxu0 %vm381_vm0, %v1968_v34  ;;  %v601_v58 = vrot.slane %v600_v10, 4  ;;  %v614_v62 = vor.u32 %v613_v35, %v610_v45  ;;  %v631_v33 = vshll.u32 %v295_v61, 16  ;;  %v1938_v9 = vcombine.low %v578_v22, %v2588_v54 }
  0x35   : > { %2138 = vmatprep.mubr.msk.bf16.mxu0 %vm381_vm0, %v1974_v31  ;;  %v619_v0 = vrot.slane %v617_v49, 5  ;;  %v628_v46 = vor.u32 %v627_v36, %v624_v60  ;;  %v638_v47 = vrot.slane %v636_v52, 4  ;;  %v641_v13 = vrot.slane %v639_v55, 5  ;;  %v2276_v49 = vld [vmem:[%s2787_s1 + $0x40] sm:$0xff]  }
  0x36   : > { %v2598_v2 = vsel %vm2463_vm3, %v601_v58, %v605_v40  ;;  %v615_v4 = vrot.slane %v614_v62, 4  ;;  %v633_v43 = vrot.slane %v631_v33, 5  ;;  %v667_v16 = vshll.u32 %v2512_v63, 16  ;;  %2098 = vmatprep.mubr.msk.bf16.mxu1 %vm381_vm0, %v1938_v9  ;;  %v302_v40 = vld [vmem:[%s2352_s10 + $0x40] sm:$0xf] }
  0x37   : > { %v629_v31 = vrot.slane %v628_v46, 4  ;;  %v645_v41 = vshll.u32 %v297_v53, 16  ;;  %v2795_v11 = vshrl.u32 %v2505_v59, 16  ;;  %v642_v51 = vor.u32 %v641_v13, %v638_v47  ;;  %v2278_v60 = vld [vmem:[%s2788_s2] sm:$0xff]  }
  0x38   : > { %v2608_v28 = vsel %vm2463_vm3, %v615_v4, %v619_v0  ;;  %v2796_v32 = vshll.u32 %v2505_v59, 16  ;;  %v659_v55 = vshll.u32 %v299_v1, 16  ;;  %v1976_v48 = vcombine.low %v2477_v20, %v2505_v59  ;;  %v303_v4 = vld [vmem:[%s2352_s10 + $0x44] sm:$0x1] }
  0x39   : > { %v652_v52 = vrot.slane %v2795_v11, 4  ;;  %v1939_v27 = vcombine.low %v2598_v2, %v2608_v28  ;;  %v647_v22 = vrot.slane %v645_v41, 5  ;;  %v2797_v45 = vshrl.u32 %v2512_v63, 16 }
  0x3a   : > { %v655_v61 = vrot.slane %v2796_v32, 5  ;;  %v2621_v42 = vsel %vm2463_vm3, %v629_v31, %v633_v43  ;;  %v643_v10 = vrot.slane %v642_v51, 4  ;;  %v661_v20 = vrot.slane %v659_v55, 5 }
  0x3b   : > { %v666_v34 = vrot.slane %v2797_v45, 4  ;;  %2099 = vmatmul.mubr.msk.bf16.vlgmr.msra.gmra.mrb[0].mxu1 %vm381_vm0, %v1939_v27  ;;  %v669_v59 = vrot.slane %v667_v16, 5  ;;  %v673_v36 = vshll.u32 %v301_v23, 16  ;;  %v1412_v58 = vshrl.u32 %v302_v40, 16 }
  0x3c   : > { %v656_v35 = vor.u32 %v655_v61, %v652_v52  ;;  %v2798_v62 = vcombine.low %v2443_v44, %v2473_v3  ;;  %2107 = vmatpush3.bf16.msra.mxu1 %v2495_v39  ;;  %v648_v53 = vsel %vm2463_vm3, %v643_v10, %v647_v22  ;;  %v1415_v9 = vshll.u32 %v302_v40, 16 }
  0x3d   : > { %v1940_v0 = vcombine.low %v2621_v42, %v648_v53  ;;  %v670_v46 = vor.u32 %v669_v59, %v666_v34  ;;  %v675_v47 = vrot.slane %v673_v36, 5  ;;  %v1414_v1 = vrot.slane %v1412_v58, 4  ;;  %2166 = vmatprep.subr.bf16.mxu1 %v2278_v60 }
  0x3e   : > { %2139 = vmatmul.mubr.msk.bf16.vlgmr.msra.gmra.mrb[0].mxu0 %vm381_vm0, %v2798_v62  ;;  %v657_v33 = vrot.slane %v656_v35, 4  ;;  %v1417_v44 = vrot.slane %v1415_v9, 5  ;;  %v1977_v43 = vcombine.low %v2512_v63, %v302_v40  ;;  %v1421_v13 = vshll.u32 %v303_v4, 16 }
  0x3f   : > { %2147 = vmatpush3.bf16.msra.mxu0 %v2529_v26  ;;  %2142 = vmatprep.mubr.msk.bf16.mxu0 %vm381_vm0, %v1976_v48  ;;  %v671_v39 = vrot.slane %v670_v46, 4  ;;  %v1983_v16 = vcombine.low %v2356_v5, %v2359_v6  ;;  %v1947_v41 = vcombine.low %v2417_v25, %v2426_v30  ;;  %v1984_v5 = vcombine.low %v2362_v7, %v2365_v8 }
  0x40   : > { %2156 = vmatprep.subr.bf16.mxu0 %v2276_v49  ;;  %2102 = vmatprep.mubr.msk.bf16.mxu1 %vm381_vm0, %v1940_v0  ;;  %v662_v3 = vsel %vm2463_vm3, %v657_v33, %v661_v20  ;;  %v1418_v26 = vor.u32 %v1417_v44, %v1414_v1  ;;  %v1423_v51 = vrot.slane %v1421_v13, 5  ;;  %v1948_v6 = vcombine.low %v2449_v50, %v2459_v56 }
  0x41   : > { %v676_v31 = vsel %vm2463_vm3, %v671_v39, %v675_v47  ;;  %v1949_v25 = vcombine.low %v2482_v29, %v2490_v38  ;;  %v1985_v30 = vcombine.low %v2388_v15, %v2401_v18  ;;  %v1950_v7 = vcombine.low %v2524_v24, %v2535_v37 }
  0x42   : > { %v1941_v11 = vcombine.low %v662_v3, %v676_v31  ;;  %v1419_v52 = vrot.slane %v1418_v26, 4  ;;  %v1986_v8 = vcombine.low %v2404_v19, %v312_v57  ;;  %v1992_v50 = vcombine.low %v2588_v54, %v2598_v2 }
  0x43   : > { %v1993_v15 = vcombine.low %v2608_v28, %v2621_v42  ;;  %v1994_v18 = vcombine.low %v648_v53, %v662_v3 }
  0x44   : > { %2103 = vmatmul.mubr.msk.bf16.gmra.mrb[4].mxu1 %vm381_vm0, %v1941_v11  ;;  %v1424_v63 = vsel %vm2463_vm3, %v1419_v52, %v1423_v51 }
  0x45   : > { %2108 = vmatprep.mubr.msk.bf16.mxu1 %vm381_vm0, %v1947_v41  ;;  %v1995_v19 = vcombine.low %v676_v31, %v1424_v63 }
  0x46   : > { %2143 = vmatmul.mubr.msk.bf16.gmra.mrb[4].mxu0 %vm381_vm0, %v1977_v43 }
  0x47   : > { %2148 = vmatprep.mubr.msk.bf16.mxu0 %vm381_vm0, %v1983_v16 }
  0x4c   : > { %2109 = vmatmul.mubr.msk.bf16.vlgmr.msra.gmra.mrb[0].mxu1 %vm381_vm0, %v1948_v6 }
  0x4d   : > { %2167 = vmatpush3.bf16.msra.mxu1 %v2278_v60  ;;  %2112 = vmatprep.mubr.msk.bf16.mxu1 %vm381_vm0, %v1949_v25 }
  0x4e   : > { %2149 = vmatmul.mubr.msk.bf16.vlgmr.msra.gmra.mrb[0].mxu0 %vm381_vm0, %v1984_v5 }
  0x4f   : > { %2157 = vmatpush3.bf16.msra.mxu0 %v2276_v49  ;;  %2152 = vmatprep.mubr.msk.bf16.mxu0 %vm381_vm0, %v1985_v30 }
  0x54   : > { %2113 = vmatmul.mubr.msk.bf16.gmra.mrb[4].mxu1 %vm381_vm0, %v1950_v7 }
  0x55   : > { %2168 = vmatprep.mubr.msk.bf16.mxu1 %vm381_vm0, %v2376_v12 }
  0x56   : > { %2153 = vmatmul.mubr.msk.bf16.gmra.mrb[4].mxu0 %vm381_vm0, %v1986_v8 }
  0x57   : > { %2158 = vmatprep.mubr.msk.bf16.mxu0 %vm381_vm0, %v1992_v50 }
  0x5c   : > { %2169 = vmatmul.mubr.msk.bf16.vlgmr.msra.gmra.mrb[8].mxu1 %vm381_vm0, %v2385_v14 }
  0x5d   : > { %2172 = vmatprep.mubr.msk.bf16.mxu1 %vm381_vm0, %v2396_v17 }
  0x5e   : > { %2159 = vmatmul.mubr.msk.bf16.vlgmr.msra.gmra.mrb[0].mxu0 %vm381_vm0, %v1993_v15 }
  0x5f   : > { %2162 = vmatprep.mubr.msk.bf16.mxu0 %vm381_vm0, %v1994_v18 }
  0x64   : > { %2173 = vmatmul.mubr.msk.bf16.gmra.mrb[12].mxu1 %vm381_vm0, %v2411_v21 }
  0x66   : > { %2163 = vmatmul.mubr.msk.bf16.gmra.mrb[4].mxu0 %vm381_vm0, %v1995_v19 }
 0x11f   : > { %v2110_v12 = vpop.f32.mrb[0].mxu1 }
 0x120   : > { %v852_v56 = vpop.f32.mrb[1].mxu1 }
 0x121   : > { %v2111_v29 = vpop.f32.mrb[2].mxu1 }
 0x122   : > { %v855_v38 = vpop.f32.mrb[3].mxu1 }
 0x127   : > { %v2114_v24 = vpop.f32.mrb[4].mxu1 }
 0x128   : > { %v2692_v37 = vpop.f32.mrb[5].mxu1 }
 0x129   : > { %v2694_v54 = vpop.f32.mrb[6].mxu1 }
 0x12a   : > { %v2696_v14 = vpop.f32.mrb[7].mxu1 }
 0x12f   : > { %v2170_v17 = vpop.f32.mrb[8].mxu1 }
 0x130   : > { %v2020_v28 = vpack.c.bf16 %v2170_v17, %v2170_v17  ;;  %v1635_v32 = vpop.f32.mrb[9].mxu1  ;;  %v1729_v61 = vmul.f32 %v2170_v17, %v2170_v17  ;;  %v1709_v35 = vsel %vm1538_vm5, %v2170_v17, 0.0 }
 0x131   : > { %v2160_v2 = vpop.f32.mrb[0].mxu0  ;;  %v2018_v27 = vpack.c.bf16 %v1635_v32, %v1635_v32  ;;  %v2171_v48 = vpop.f32.mrb[10].mxu1  ;;  %v1727_v34 = vmul.f32 %v1635_v32, %v1635_v32  ;;  %v1706_v20 = vsel %vm1538_vm5, %v1635_v32, 0.0 }
 0x132   : > { %v2176_v21 = vadd.f32 %v2160_v2, %v2110_v12  ;;  %v1482_v23 = vpop.f32.mrb[1].mxu0  ;;  %1700 = vst.msk [vmem:[%s2702_s28 + $0x8] sm:$0xf] %vm1529_vm4, %v2020_v28  ;;  %v1638_v10 = vpop.f32.mrb[11].mxu1  ;;  %v2021_v36 = vpack.c.bf16 %v2171_v48, %v2171_v48  ;;  %v1738_v62 = vsel %vm1538_vm5, %v1729_v61, 0.0  ;;  %v1730_v26 = vmul.f32 %v2171_v48, %v2171_v48 }
 0x133   : > { %v2177_v55 = vadd.f32 %v1482_v23, %v852_v56  ;;  %v2161_v22 = vpop.f32.mrb[2].mxu0  ;;  %1698 = vst.msk [vmem:[%s2702_s28] sm:$0xf] %vm1529_vm4, %v2018_v27  ;;  %v2019_v33 = vpack.c.bf16 %v1638_v10, %v1638_v10  ;;  %v1735_v0 = vsel %vm1538_vm5, %v1727_v34, 0.0  ;;  %v1707_v47 = vsel %vm1538_vm5, %v1638_v10, 0.0 }
 0x134   : > { %v1523_v45 = vpack.c.bf16 %v2176_v21, %v2176_v21  ;;  %v1485_v42 = vpop.f32.mrb[3].mxu0  ;;  %v1542_v60 = vsel %vm1538_vm5, %v2176_v21, 0.0  ;;  %v2178_v59 = vadd.f32 %v2161_v22, %v2111_v29  ;;  %v1562_v58 = vmul.f32 %v2176_v21, %v2176_v21  ;;  %1701 = vst.msk [vmem:[%s2702_s28 + $0xc] sm:$0xf] %vm1529_vm4, %v2021_v36 }
 0x135   : > { %v1521_v40 = vpack.c.bf16 %v2177_v55, %v2177_v55  ;;  %v1560_v49 = vmul.f32 %v2177_v55, %v2177_v55  ;;  %v2179_v53 = vadd.f32 %v1485_v42, %v855_v38  ;;  %v1539_v9 = vsel %vm1538_vm5, %v2177_v55, 0.0  ;;  %1699 = vst.msk [vmem:[%s2702_s28 + $0x4] sm:$0xf] %vm1529_vm4, %v2019_v33 }
 0x136   : > { %1532 = vst.msk [vmem:[%s2707_s7 + $0x8] sm:$0xf] %vm1529_vm4, %v1523_v45  ;;  %v1524_v46 = vpack.c.bf16 %v2178_v59, %v2178_v59  ;;  %v1708_v16 = vadd.f32 %v1707_v47, %v1706_v20  ;;  %v1728_v31 = vmul.f32 %v1638_v10, %v1638_v10  ;;  %v1563_v52 = vmul.f32 %v2178_v59, %v2178_v59 }
 0x137   : > { %1530 = vst.msk [vmem:[%s2707_s7] sm:$0xf] %vm1529_vm4, %v1521_v40  ;;  %v1568_v1 = vsel %vm1538_vm5, %v1560_v49, 0.0  ;;  %v1522_v4 = vpack.c.bf16 %v2179_v53, %v2179_v53  ;;  %v1540_v44 = vsel %vm1538_vm5, %v2179_v53, 0.0  ;;  %v1561_v3 = vmul.f32 %v2179_v53, %v2179_v53  ;;  %v2174_v43 = vpop.f32.mrb[12].mxu1 }
 0x138   : > { %1533 = vst.msk [vmem:[%s2707_s7 + $0xc] sm:$0xf] %vm1529_vm4, %v1524_v46  ;;  %v1541_v13 = vadd.f32 %v1540_v44, %v1539_v9  ;;  %v1651_v11 = vpop.f32.mrb[13].mxu1  ;;  %v2024_v5 = vpack.c.bf16 %v2174_v43, %v2174_v43  ;;  %v1710_v7 = vadd.f32 %v1709_v35, %v1708_v16  ;;  %v1736_v8 = vsel %vm1538_vm5, %v1728_v31, 0.0 }
 0x139   : > { %v2164_v39 = vpop.f32.mrb[4].mxu0  ;;  %1531 = vst.msk [vmem:[%s2707_s7 + $0x4] sm:$0xf] %vm1529_vm4, %v1522_v4  ;;  %v1569_v51 = vsel %vm1538_vm5, %v1561_v3, 0.0  ;;  %v2175_v25 = vpop.f32.mrb[14].mxu1  ;;  %v1571_v18 = vsel %vm1538_vm5, %v1562_v58, 0.0  ;;  %v1737_v12 = vadd.f32 %v1736_v8, %v1735_v0  ;;  %v2022_v28 = vpack.c.bf16 %v1651_v11, %v1651_v11 }
 0x13a   : > { %v1498_v41 = vpop.f32.mrb[5].mxu0  ;;  %v2180_v63 = vadd.f32 %v2164_v39, %v2114_v24  ;;  %v1543_v30 = vadd.f32 %v1542_v60, %v1541_v13  ;;  %v1570_v57 = vadd.f32 %v1569_v51, %v1568_v1  ;;  %v1654_v15 = vpop.f32.mrb[15].mxu1  ;;  %v1544_v19 = vsel %vm1538_vm5, %v2178_v59, 0.0  ;;  %1704 = vst.msk [vmem:[%s2702_s28 + $0x18] sm:$0xf] %vm1529_vm4, %v2024_v5 }
 0x13b   : > { %v2165_v6 = vpop.f32.mrb[6].mxu0  ;;  %v1711_v29 = vsel %vm1538_vm5, %v2171_v48, 0.0  ;;  %v2181_v24 = vadd.f32 %v1498_v41, %v2692_v37  ;;  %v1740_v17 = vsel %vm1538_vm5, %v1730_v26, 0.0  ;;  %v1739_v21 = vadd.f32 %v1738_v62, %v1737_v12  ;;  %1702 = vst.msk [vmem:[%s2702_s28 + $0x10] sm:$0xf] %vm1529_vm4, %v2022_v28 }
 0x13c   : > { %v1501_v50 = vpop.f32.mrb[7].mxu0  ;;  %v1527_v56 = vpack.c.bf16 %v2180_v63, %v2180_v63  ;;  %v1572_v38 = vadd.f32 %v1571_v18, %v1570_v57  ;;  %v1545_v2 = vadd.f32 %v1544_v19, %v1543_v30  ;;  %v1712_v23 = vadd.f32 %v1711_v29, %v1710_v7 }
 0x13d   : > { %v1573_v32 = vsel %vm1538_vm5, %v1563_v52, 0.0  ;;  %v1525_v61 = vpack.c.bf16 %v2181_v24, %v2181_v24  ;;  %v1546_v55 = vsel %vm1538_vm5, %v2181_v24, 0.0  ;;  %v1564_v27 = vmul.f32 %v2181_v24, %v2181_v24 }
 0x13e   : > { %1536 = vst.msk [vmem:[%s2707_s7 + $0x18] sm:$0xf] %vm1529_vm4, %v1527_v56  ;;  %v1547_v22 = vadd.f32 %v1546_v55, %v1545_v2  ;;  %v1574_v48 = vadd.f32 %v1573_v32, %v1572_v38  ;;  %v1713_v37 = vsel %vm1538_vm5, %v1651_v11, 0.0  ;;  %v1731_v45 = vmul.f32 %v1651_v11, %v1651_v11 }
 0x13f   : > { %1534 = vst.msk [vmem:[%s2707_s7 + $0x10] sm:$0xf] %vm1529_vm4, %v1525_v61  ;;  %v1575_v34 = vsel %vm1538_vm5, %v1564_v27, 0.0  ;;  %v1714_v42 = vadd.f32 %v1713_v37, %v1712_v23  ;;  %v1741_v10 = vadd.f32 %v1740_v17, %v1739_v21  ;;  %v2182_v35 = vadd.f32 %v2165_v6, %v2694_v54 }
 0x140   : > { %v1576_v40 = vadd.f32 %v1575_v34, %v1574_v48  ;;  %v1742_v49 = vsel %vm1538_vm5, %v1731_v45, 0.0  ;;  %v2025_v60 = vpack.c.bf16 %v2175_v25, %v2175_v25  ;;  %v1717_v36 = vsel %vm1538_vm5, %v2174_v43, 0.0 }
 0x141   : > { %v1743_v20 = vadd.f32 %v1742_v49, %v1741_v10  ;;  %v1528_v59 = vpack.c.bf16 %v2182_v35, %v2182_v35  ;;  %v2183_v58 = vadd.f32 %v1501_v50, %v2696_v14  ;;  %v2023_v62 = vpack.c.bf16 %v1654_v15, %v1654_v15 }
 0x142   : > { %1705 = vst.msk [vmem:[%s2702_s28 + $0x1c] sm:$0xf] %vm1529_vm4, %v2025_v60  ;;  %v1715_v53 = vsel %vm1538_vm5, %v1654_v15, 0.0  ;;  %v1550_v33 = vsel %vm1538_vm5, %v2180_v63, 0.0  ;;  %v1733_v54 = vmul.f32 %v2174_v43, %v2174_v43  ;;  %v1732_v0 = vmul.f32 %v1654_v15, %v1654_v15 }
 0x143   : > { %1537 = vst.msk [vmem:[%s2707_s7 + $0x1c] sm:$0xf] %vm1529_vm4, %v1528_v59  ;;  %v1716_v9 = vadd.f32 %v1715_v53, %v1714_v42  ;;  %v1566_v46 = vmul.f32 %v2180_v63, %v2180_v63  ;;  %v1526_v47 = vpack.c.bf16 %v2183_v58, %v2183_v58  ;;  %v1548_v1 = vsel %vm1538_vm5, %v2183_v58, 0.0  ;;  %1703 = vst.msk [vmem:[%s2702_s28 + $0x14] sm:$0xf] %vm1529_vm4, %v2023_v62 }
 0x144   : > { %v1565_v4 = vmul.f32 %v2183_v58, %v2183_v58  ;;  %v1734_v44 = vmul.f32 %v2175_v25, %v2175_v25  ;;  %v1549_v14 = vadd.f32 %v1548_v1, %v1547_v22  ;;  %v1744_v39 = vsel %vm1538_vm5, %v1732_v0, 0.0 }
 0x145   : > { %v1718_v3 = vadd.f32 %v1717_v36, %v1716_v9  ;;  %v1567_v26 = vmul.f32 %v2182_v35, %v2182_v35  ;;  %v1719_v13 = vsel %vm1538_vm5, %v2175_v25, 0.0  ;;  %1535 = vst.msk [vmem:[%s2707_s7 + $0x14] sm:$0xf] %vm1529_vm4, %v1526_v47  ;;  %v1745_v16 = vadd.f32 %v1744_v39, %v1743_v20 }
 0x146   : > { %v1577_v43 = vsel %vm1538_vm5, %v1565_v4, 0.0  ;;  %v1746_v31 = vsel %vm1538_vm5, %v1733_v54, 0.0  ;;  %v1551_v41 = vadd.f32 %v1550_v33, %v1549_v14  ;;  %v1579_v51 = vsel %vm1538_vm5, %v1566_v46, 0.0 }
 0x147   : > { %v1578_v11 = vadd.f32 %v1577_v43, %v1576_v40  ;;  %v1720_v52 = vadd.f32 %v1719_v13, %v1718_v3  ;;  %v1552_v63 = vsel %vm1538_vm5, %v2182_v35, 0.0  ;;  %v1747_v5 = vadd.f32 %v1746_v31, %v1745_v16 }
 0x148   : > { %v1748_v6 = vsel %vm1538_vm5, %v1734_v44, 0.0  ;;  %v1553_v30 = vadd.f32 %v1552_v63, %v1551_v41  ;;  %v1581_v7 = vsel %vm1538_vm5, %v1567_v26, 0.0 }
 0x149   : > { %v1580_v57 = vadd.f32 %v1579_v51, %v1578_v11  ;;  %v1721_v25 = vrot.slane %v1720_v52, 4  ;;  %v1749_v8 = vadd.f32 %v1748_v6, %v1747_v5 }
 0x14a   : > { %v1554_v50 = vrot.slane %v1553_v30, 4 }
 0x14b   : > { %v1582_v15 = vadd.f32 %v1581_v7, %v1580_v57  ;;  %v1722_v18 = vadd.f32 %v1721_v25, %v1720_v52  ;;  %v1750_v19 = vrot.slane %v1749_v8, 4 }
 0x14c   : > { %v1555_v12 = vadd.f32 %v1554_v50, %v1553_v30 }
 0x14d   : > { %v1583_v56 = vrot.slane %v1582_v15, 4  ;;  %v1723_v29 = vrot.slane %v1722_v18, 2  ;;  %v1751_v38 = vadd.f32 %v1750_v19, %v1749_v8 }
 0x14e   : > { %v1556_v24 = vrot.slane %v1555_v12, 2 }
 0x14f   : > { %v1584_v2 = vadd.f32 %v1583_v56, %v1582_v15  ;;  %v1724_v17 = vadd.f32 %v1723_v29, %v1722_v18  ;;  %v1752_v21 = vrot.slane %v1751_v38, 2 }
 0x150   : > { %v1557_v28 = vadd.f32 %v1556_v24, %v1555_v12 }
 0x151   : > { %v1585_v23 = vrot.slane %v1584_v2, 2  ;;  %v1725_v32 = vrot.slane %v1724_v17, 1  ;;  %v1753_v61 = vadd.f32 %v1752_v21, %v1751_v38 }
 0x152   : > { %v1558_v55 = vrot.slane %v1557_v28, 1 }
 0x153   : > { %v1586_v27 = vadd.f32 %v1585_v23, %v1584_v2  ;;  %v1754_v22 = vrot.slane %v1753_v61, 1  ;;  %v1726_v37 = vadd.f32 %v1725_v32, %v1724_v17 }
 0x154   : > { %v1559_v34 = vadd.f32 %v1558_v55, %v1557_v28 }
 0x155   : > { %v1587_v48 = vrot.slane %v1586_v27, 1  ;;  %v1755_v45 = vadd.f32 %v1754_v22, %v1753_v61 }
 0x157   : > { %v1588_v42 = vadd.f32 %v1587_v48, %v1586_v27  ;;  %v1756_v10 = vsel %vm1589_vm6, %v1726_v37, %v1755_v45 }
 0x158   : > { %1757 = vst.msk [vmem:[%s284_s11] sm:$0x3] %vm1591_vm7, %v1756_v10 }
 0x159   : > { %v1590_v35 = vsel %vm1589_vm6, %v1559_v34, %v1588_v42 }
 0x15a   : > { %1592 = vst.msk [vmem:[%s280_s14] sm:$0x3] %vm1591_vm7, %v1590_v35 }
 0x15b PF: > { %s17_s21 = sadd.s32 1, %s2289_s21  }
 0x15c   : > { %p14_p4 = scmp.ge.s32.totalorder %s17_s21, 4  }
 0x15e   :  { %16 = sbr.rel (!%p14_p4) target bundleno = 1 (0x1), region = 98 }

// kernel: residual_block_forward.5
= control target key start
LH: loop header
LB: loop body
LE: loop exit
PB: predicated region body
PF: predicated region fallthrough
CT: control target
= control target key end

     0   :  { %15 = vsyncpa [#allocation3], 0  ;;  %s1247_s0 = inlined_call_operand.vmem [shape: bf16[2,64,32], index: 0, kind: input, shape index: {}]   ;;  %s1248_s1 = inlined_call_operand.vmem [shape: bf16[2,64,32], index: 1, kind: input, shape index: {}]   ;;  %s1249_s2 = inlined_call_operand.vmem [shape: f32[1,32], index: 2, kind: input, shape index: {}]   ;;  %s1250_s3 = inlined_call_operand.vmem [shape: f32[1,32], index: 3, kind: input, shape index: {}]   ;;  %s1251_s4 = inlined_call_operand.vmem [shape: f32[1,32], index: 4, kind: input, shape index: {}]   ;;  %s1252_s5 = inlined_call_operand.vmem [shape: f32[1,32], index: 5, kind: input, shape index: {}]   ;;  %s1253_s6 = inlined_call_operand.vmem [shape: f32[32,2], index: 6, kind: input, shape index: {}]   ;;  %s1254_s7 = inlined_call_operand.vmem [shape: f32[1,2], index: 7, kind: input, shape index: {}]   ;;  %s1255_s8 = inlined_call_operand.vmem [shape: f32[2,32], index: 8, kind: input, shape index: {}]   ;;  %s1256_s9 = inlined_call_operand.vmem [shape: f32[1,32], index: 9, kind: input, shape index: {}]   ;;  %s1257_s10 = inlined_call_operand.hbm [shape: f32[2,64,32], index: 10, kind: output, shape index: {}]  }
   0x1   :  { %17 = vsyncpa [#allocation3 + $0x1], 0  ;;  %s1048_s13 = smov 0   ;;  %s1050_s14 = smov 0  }
   0x2   :  { %s1052_s15 = smov 0   ;;  %s1054_s16 = smov 0  }
   0x3 LB: > { %s1069_s17 = sadd.s32 4294967295, %s985_s16   ;;  %s783_s18 = sadd.s32 4294967294, %s985_s16   ;;  %s985_s16 = sphi %s1054_s16, %s1263_s16   ;;  %s981_s15 = sphi %s1052_s15, %s1262_s15   ;;  %s977_s14 = sphi %s1050_s14, %s1261_s14   ;;  %s973_s13 = sphi %s1048_s13, %s1260_s13  }
   0x4   : > { %s1073_s19 = sadd.s32 1, %s985_s16   ;;  %s250_s20 = sadd.s32 1, %s981_s15 }
   0x5   : > { %s247_s21 = ssub.s32 %s985_s16, %s1073_s19  ;;  %p260_p0 = scmp.ne.s32.totalorder %s981_s15, %s977_s14 }
   0x6   : > { %p248_p1 = scmp.eq.s32.totalorder %s247_s21, 0  ;;  %p261_p2 = scmp.eq.s32.totalorder %s1069_s17, 1 }
   0x7   : > { %p266_p3 = scmp.ne.s32.totalorder %s977_s14, %s973_s13  ;;  %p267_p4 = scmp.eq.s32.totalorder %s783_s18, 1 }
   0x8   : > { %s1084_s22 = scalar_select %p248_p1, %s981_s15, %s250_s20  }
   0x9   : > { %p1086_p5 = por %p261_p2, %p260_p0  ;;  %p1090_p6 = por %p267_p4, %p266_p3 }
   0xa   : > { %p786_p7 = scmp.ge.s32.totalorder %s985_s16, 1  ;;  %p325_p8 = scmp.lt.s32.totalorder %s985_s16, 3 }
   0xc   : > { %p326_p9 = pnand %p786_p7, %p325_p8 }
   0xd   : > { %v494_v0 = vld [vmem:[%s1253_s6] sm:$0xff] (!%p326_p9)  ;;  %v495_v1 = vld [vmem:[%s1253_s6 + $0x8] sm:$0xff] (!%p326_p9)  ;;  %v496_v2 = vld [vmem:[%s1253_s6 + $0x10] sm:$0xff] (!%p326_p9)  ;;  %v987_v3 = vmov (!%p326_p9), 0.0|0.0   ;;  %vm988_vm0 = vmmov (!%p326_p9), 0   ;;  %v989_v6 = vmov (!%p326_p9), 0.0  }
   0xe   : > { %329 = sbr.rel (%p326_p9) target bundleno = 543 (0x21f), region = 60  ;;  %869 = vmatprep.subr.bf16.mxu0 (!%p326_p9), %v987_v3  ;;  %v870_v4 = vpack.c.bf16 (!%p326_p9), %v495_v1, %v494_v0  ;;  %v497_v5 = vld [vmem:[%s1253_s6 + $0x18] sm:$0xff] (!%p326_p9)  ;;  %861 = vmatprep.mubr.msk.f32.mxu0 (!%p326_p9), %vm988_vm0, %v989_v6  ;;  %p368_p10 = scmp.lt.s32.totalorder (!%p326_p9), %s1069_s17, 1  ;;  %v792_v14 = vld [vmem:[%s1249_s2] ss:$0 sm:$0xff] (!%p326_p9)  ;;  %vm470_vm1 = vcmask (!%p326_p9), 261120  }
   0xf   : > { %864 = vmatprep.subr.mxu1 (!%p326_p9), %v989_v6  ;;  %866 = vmatprep.mubr.msk.f32.mxu1 (!%p326_p9), %vm988_vm0, %v989_v6  ;;  %v873_v7 = vpack.c.bf16 (!%p326_p9), %v497_v5, %v496_v2  ;;  %v793_v21 = vld [vmem:[%s1250_s3] ss:$0 sm:$0xff] (!%p326_p9)  ;;  %vm579_vm2 = vcmask (!%p326_p9), 1041408   ;;  %vm575_vm3 = vcmask (!%p326_p9), 15360  }
  0x10   : > { %871 = vmatpush3.bf16.msra.mxu0 (!%p326_p9), %v870_v4  ;;  %v573_v60 = vld [vmem:[%s1255_s8] sm:$0x3] (!%p326_p9) }
  0x11   : > { %872 = vmatprep.subr.bf16.mxu0 (!%p326_p9), %v987_v3  ;;  %865 = vmatpush3.msk.msra.mxu1 (!%p326_p9), %vm579_vm2, %v573_v60  ;;  %v498_v61 = vld [vmem:[%s1254_s7] sm:$0x1] (!%p326_p9) }
  0x12   : > { %v574_v2 = vld [vmem:[%s1256_s9] sm:$0x1] (!%p326_p9) }
  0x14   : > { %874 = vmatpush3.bf16.msra.mxu0 (!%p326_p9), %v873_v7 }
  0x15   : > { %s1110_s18 = scalar_select %p368_p10, %s1069_s17, 1 }
  0x17   : > { %s805_s20 = sshll.u32 %s1110_s18, 5  ;;  %s365_s18 = sand.u32 1, %s977_s14  }
  0x18   : > { %s372_s26 = scalar_lea.vmem %s1247_s0, %s805_s20  ;;  %s377_s30 = scalar_lea.vmem %s1248_s1, %s805_s20 }
  0x19   : > { %v809_v8 = vld [vmem:[%s372_s26] sm:$0xff]   ;;  %v840_v9 = vld [vmem:[%s372_s26 + $0x8] sm:$0xff]   ;;  %v841_v13 = vld [vmem:[%s372_s26 + $0x10] sm:$0xff]   ;;  %s787_s25 = sshll.u32 %s365_s18, 6  ;;  %s990_s20 = smov [#allocation2]  }
  0x1a   : > { %v810_v10 = vunpack.c.l.bf16 %v809_v8  ;;  %v811_v11 = vunpack.c.h.bf16 %v809_v8  ;;  %v814_v12 = vunpack.c.l.bf16 %v840_v9  ;;  %v815_v15 = vunpack.c.h.bf16 %v840_v9  ;;  %v842_v17 = vld [vmem:[%s372_s26 + $0x18] sm:$0xff]   ;;  %v825_v9 = vld [vmem:[%s377_s30] sm:$0xff]   ;;  %s807_s26 = sshll.u32 %s1069_s17, 10  ;;  %s367_s27 = scalar_lea.vmem [#allocation2], %s787_s25 }
  0x1b   : > { %v818_v16 = vunpack.c.l.bf16 %v841_v13  ;;  %v819_v22 = vunpack.c.h.bf16 %v841_v13  ;;  %v822_v24 = vunpack.c.l.bf16 %v842_v17  ;;  %v823_v29 = vunpack.c.h.bf16 %v842_v17  ;;  %v845_v13 = vld [vmem:[%s377_s30 + $0x18] sm:$0xff]   ;;  %s709_s28 = sshll.u32 %s367_s27, 4  ;;  %s1192_s11 = scalar_lea.hbm %s1257_s10, %s807_s26  ;;  %s1194_s28 = int_to_ptr.vmem [resolvable:$true] %s709_s28 }
  0x1c   : > { %v401_v18 = vmul.f32 %v810_v10, %v792_v14  ;;  %v402_v19 = vmul.f32 %v811_v11, %v792_v14  ;;  %v403_v20 = vmul.f32 %v814_v12, %v792_v14  ;;  %v404_v23 = vmul.f32 %v815_v15, %v792_v14  ;;  %v843_v11 = vld [vmem:[%s377_s30 + $0x8] sm:$0xff]   ;;  %v844_v12 = vld [vmem:[%s377_s30 + $0x10] sm:$0xff]   ;;  %s1206_s17 = scalar_lea.sflag [#allocation3], %s365_s18  ;;  %s923_s12 = scalar_lea.vmem %s1194_s28, 1024 }
  0x1d   : > { %v405_v25 = vmul.f32 %v818_v16, %v792_v14  ;;  %v406_v30 = vmul.f32 %v819_v22, %v792_v14  ;;  %v407_v32 = vmul.f32 %v822_v24, %v792_v14  ;;  %v408_v38 = vmul.f32 %v823_v29, %v792_v14  ;;  %p924_p11 = scmp.ne.s32.totalorder %s1194_s28, %s923_s12  ;;  %s927_s21 = sshll.u32 %s990_s20, 4  ;;  %s928_s21 = int_to_ptr.vmem [resolvable:$false] %s927_s21 }
  0x1e   : > { %v1124_v26 = vadd.f32 %v793_v21, %v401_v18  ;;  %v1126_v27 = vadd.f32 %v793_v21, %v402_v19  ;;  %v1128_v28 = vadd.f32 %v793_v21, %v403_v20  ;;  %v1130_v31 = vadd.f32 %v793_v21, %v404_v23  ;;  %v794_v18 = vld [vmem:[%s1251_s4] ss:$0 sm:$0xff]  ;;  %s929_s25 = scalar_lea.vmem %s928_s21, 2048  ;;  %p930_p0 = scmp.lt.s32.totalorder %s1194_s28, %s928_s21 }
  0x1f   : > { %v1132_v33 = vadd.f32 %v793_v21, %v405_v25  ;;  %v1140_v39 = vadd.f32 %v793_v21, %v406_v30  ;;  %v1144_v42 = vadd.f32 %v793_v21, %v407_v32  ;;  %v1148_v45 = vadd.f32 %v793_v21, %v408_v38  ;;  %v795_v32 = vld [vmem:[%s1252_s5] ss:$0 sm:$0xff]  ;;  %p925_p12 = pnand %p924_p11, %p1086_p5  ;;  %p931_p1 = scmp.lt.s32.totalorder %s929_s25, %s923_s12 }
  0x20   : > { %v471_v34 = vsel %vm470_vm1, %v1124_v26, 0.0  ;;  %v472_v35 = vsel %vm470_vm1, %v1126_v27, 0.0  ;;  %v474_v36 = vsel %vm470_vm1, %v1128_v28, 0.0  ;;  %v476_v40 = vsel %vm470_vm1, %v1130_v31, 0.0 }
  0x21   : > { %v473_v37 = vadd.f32 %v472_v35, %v471_v34  ;;  %v478_v43 = vsel %vm470_vm1, %v1132_v33, 0.0  ;;  %v480_v46 = vsel %vm470_vm1, %v1140_v39, 0.0  ;;  %v482_v48 = vsel %vm470_vm1, %v1144_v42, 0.0  ;;  %p926_p13 = pneg %p925_p12  ;;  %p932_p2 = por %p931_p1, %p930_p0 }
  0x22   : > { %v484_v50 = vsel %vm470_vm1, %v1148_v45, 0.0  ;;  %v659_v10 = vlaneseq  ;;  %v826_v14 = vunpack.c.l.bf16 %v825_v9  ;;  %v827_v15 = vunpack.c.h.bf16 %v825_v9 }
  0x23   : > { %v475_v41 = vadd.f32 %v474_v36, %v473_v37  ;;  %v830_v16 = vunpack.c.l.bf16 %v843_v11  ;;  %v831_v17 = vunpack.c.h.bf16 %v843_v11  ;;  %v834_v20 = vunpack.c.l.bf16 %v844_v12  ;;  %p933_p3 = pnand %p932_p2, %p926_p13 }
  0x24   : > { %v660_v19 = vshrl.u32 %v659_v10, 7  ;;  %v835_v21 = vunpack.c.h.bf16 %v844_v12  ;;  %v838_v22 = vunpack.c.l.bf16 %v845_v13  ;;  %v839_v23 = vunpack.c.h.bf16 %v845_v13 }
  0x25   : > { %v477_v44 = vadd.f32 %v476_v40, %v475_v41  ;;  %v447_v24 = vmul.f32 %v826_v14, %v794_v18  ;;  %v448_v25 = vmul.f32 %v827_v15, %v794_v18  ;;  %v449_v29 = vmul.f32 %v830_v16, %v794_v18 }
  0x26   : > { %v450_v30 = vmul.f32 %v831_v17, %v794_v18  ;;  %v661_v34 = vsub.s32 0, %v660_v19  ;;  %v451_v35 = vmul.f32 %v834_v20, %v794_v18  ;;  %v452_v36 = vmul.f32 %v835_v21, %v794_v18 }
  0x27   : > { %v479_v47 = vadd.f32 %v478_v43, %v477_v44  ;;  %v453_v37 = vmul.f32 %v838_v22, %v794_v18  ;;  %v454_v38 = vmul.f32 %v839_v23, %v794_v18  ;;  %v462_v41 = vadd.f32 %v795_v32, %v447_v24 }
  0x28   : > { %v463_v43 = vadd.f32 %v795_v32, %v448_v25  ;;  %v464_v44 = vadd.f32 %v795_v32, %v449_v29 }
  0x29   : > { %v481_v49 = vadd.f32 %v480_v46, %v479_v47  ;;  %v465_v46 = vadd.f32 %v795_v32, %v450_v30 }
  0x2b   : > { %v483_v51 = vadd.f32 %v482_v48, %v481_v49  ;;  %v466_v48 = vadd.f32 %v795_v32, %v451_v35  ;;  %v467_v49 = vadd.f32 %v795_v32, %v452_v36 }
  0x2d   : > { %v485_v52 = vadd.f32 %v484_v50, %v483_v51  ;;  %v468_v50 = vadd.f32 %v795_v32, %v453_v37  ;;  %v469_v51 = vadd.f32 %v795_v32, %v454_v38 }
  0x2f   : > { %v486_v53 = vrot.slane %v485_v52, 4 }
  0x31   : > { %v487_v54 = vadd.f32 %v486_v53, %v485_v52 }
  0x33   : > { %v488_v55 = vrot.slane %v487_v54, 2 }
  0x35   : > { %v489_v56 = vadd.f32 %v488_v55, %v487_v54 }
  0x37   : > { %v490_v57 = vrot.slane %v489_v56, 1 }
  0x39   : > { %v491_v58 = vadd.f32 %v490_v57, %v489_v56 }
  0x3b   : > { %v493_v59 = vmul.f32 0.015625, %v491_v58 }
  0x3d   : > { %862 = vmatmul.mubr.msk.f32.vlgmr.msra.gmra.mrb[0].mxu0 %vm470_vm1, %v493_v59 }
 0x110   : > { %v568_v62 = vpop.f32.mrb[0].mxu0 }
 0x111   : > { %v569_v63 = vadd.f32 %v568_v62, %v498_v61  ;;  %v863_v0 = vpop.f32.mrb[1].mxu0 }
 0x113   : > { %v572_v1 = vmax.f32 %v569_v63, 0.0 }
 0x115   : > { %867 = vmatmul.mubr.msk.f32.vlgmr.msra.gmra.mrb[0].mxu1 %vm575_vm3, %v572_v1 }
 0x1e8   : > { %v649_v3 = vpop.f32.mrb[0].mxu1 }
 0x1e9   : > { %v650_v4 = vadd.f32 %v649_v3, %v574_v2  ;;  %v868_v5 = vpop.f32.mrb[1].mxu1 }
 0x1eb   : > { %v799_v6 = vmul.f32 -1.442695, %v650_v4 }
 0x1ed   : > { %919 = vpow2.f32 %v799_v6 }
 0x1f7   : > { %v920_v7 = vpop.eup %919 }
 0x1f8   : > { %v656_v8 = vadd.f32 1.0, %v920_v7 }
 0x1fa   : > { %921 = vrcp.f32 %v656_v8 }
 0x204   : > { %v922_v40 = vpop.eup %921 }
 0x205   : > { %v662_v47 = vrot.slane %v922_v40, %v661_v34 }
 0x207   : > { %v663_v52 = vmul.f32 %v662_v47, %v1124_v26  ;;  %v664_v53 = vmul.f32 %v662_v47, %v1126_v27  ;;  %v665_v54 = vmul.f32 %v662_v47, %v1128_v28  ;;  %v666_v55 = vmul.f32 %v662_v47, %v1130_v31 }
 0x208   : > { %v667_v56 = vmul.f32 %v662_v47, %v1132_v33  ;;  %v668_v57 = vmul.f32 %v662_v47, %v1140_v39  ;;  %v669_v58 = vmul.f32 %v662_v47, %v1144_v42  ;;  %v670_v59 = vmul.f32 %v662_v47, %v1148_v45 }
 0x209   : > { %v671_v60 = vadd.f32 %v663_v52, %v462_v41  ;;  %v672_v61 = vadd.f32 %v664_v53, %v463_v43  ;;  %v673_v26 = vadd.f32 %v665_v54, %v464_v44  ;;  %v674_v62 = vadd.f32 %v666_v55, %v465_v46 }
 0x20a   : > { %v675_v27 = vadd.f32 %v667_v56, %v466_v48  ;;  %v676_v63 = vadd.f32 %v668_v57, %v467_v49  ;;  %v677_v28 = vadd.f32 %v669_v58, %v468_v50  ;;  %v678_v0 = vadd.f32 %v670_v59, %v469_v51 }
 0x20b   : > { %v679_v31 = vmax.f32 %v671_v60, 0.0  ;;  %v680_v1 = vmax.f32 %v672_v61, 0.0  ;;  %v681_v33 = vmax.f32 %v673_v26, 0.0  ;;  %v682_v39 = vmax.f32 %v674_v62, 0.0 }
 0x20c   : > { %v683_v42 = vmax.f32 %v675_v27, 0.0  ;;  %v684_v45 = vmax.f32 %v676_v63, 0.0  ;;  %v685_v2 = vmax.f32 %v677_v28, 0.0  ;;  %v686_v3 = vmax.f32 %v678_v0, 0.0 }
 0x20d   : > { %687 = vst.msk [vmem:[%s367_s27] sm:$0xff] %vm470_vm1, %v679_v31  ;;  %688 = vst.msk [vmem:[%s367_s27 + $0x8] sm:$0xff] %vm470_vm1, %v680_v1 }
 0x20e   : > { %689 = vst.msk [vmem:[%s367_s27 + $0x10] sm:$0xff] %vm470_vm1, %v681_v33  ;;  %690 = vst.msk [vmem:[%s367_s27 + $0x18] sm:$0xff] %vm470_vm1, %v682_v39 }
 0x20f   : > { %691 = vst.msk [vmem:[%s367_s27 + $0x20] sm:$0xff] %vm470_vm1, %v683_v42  ;;  %692 = vst.msk [vmem:[%s367_s27 + $0x28] sm:$0xff] %vm470_vm1, %v684_v45 }
 0x210   : > { %693 = vst.msk [vmem:[%s367_s27 + $0x30] sm:$0xff] %vm470_vm1, %v685_v2  ;;  %694 = vst.msk [vmem:[%s367_s27 + $0x38] sm:$0xff] %vm470_vm1, %v686_v3 }
 0x211   : > { %936 = shalt.err (!%p933_p3)
}
 0x212   : > { %s937_s18 = scalar_lea.hbm %s1192_s11, 1024  ;;  %s941_s29 = scalar_lea.hbm %s1257_s10, 2048 }
 0x213   : > { %p938_p4 = scmp.ne.s32.totalorder %s1192_s11, %s937_s18  ;;  %p942_p9 = scmp.lt.u32.totalorder %s1192_s11, %s1257_s10 }
 0x214   : > { %p943_p10 = scmp.lt.u32.totalorder %s941_s29, %s937_s18  ;;  %p945_p12 = scmp.lt.u32.totalorder %s937_s18, %s1192_s11 }
 0x215   : > { %p939_p7 = pnand %p938_p4, %p1086_p5 }
 0x216   : > { %p944_p11 = por %p943_p10, %p942_p9 }
 0x217   : > { %p940_p8 = pneg %p939_p7 }
 0x218   : > { %p946_p13 = por %p945_p12, %p944_p11 }
 0x21a   : > { %p947_p0 = pnand %p946_p13, %p940_p8 }
 0x21c   : > { %950 = shalt.err (!%p947_p0)
}
 0x21d   : > { %s991_s12 = smov 128   ;;  %s992_s21 = smov 8  }
 0x21e   : > { %875 = dma.vmem_to_hbm [thread:$0]  (%p1086_p5), %s1194_s28, 1024, %s1192_s11, %s1206_s17, %s991_s12, %s991_s12, %s992_s21  }
 0x21f PF: > { %p881_p1 = scmp.ge.s32.totalorder %s985_s16, 2  ;;  %s724_s25 = sand.u32 1, %s973_s13  }
 0x220   : > { %s725_s18 = scalar_lea.sflag [#allocation3], %s724_s25 }
 0x221   : > { %p878_p2 = pnand %p881_p1, %p1090_p6 }
 0x223   : > { %968 = dma.done.wait (!%p878_p2), %s725_s18, 1024  }
 0x224   : > { %970 = vsyncadd (!%p878_p2), %s725_s18, 4294966272  ;;  %p20_p3 = scmp.ge.s32.totalorder %s1073_s19, 4   ;;  %s1260_s13 = smov %s977_s14 }
 0x225   : > { %s1261_s14 = smov %s981_s15  ;;  %s1262_s15 = smov %s1084_s22 }
 0x226   : > { %s1263_s16 = smov %s1073_s19  ;;  %22 = sbr.rel (!%p20_p3) target bundleno = 3 (0x3), region = 98 }
 0x22d   :  { %730 = vsyncpa [#allocation3], 1 }
 0x22e   :  { %732 = vsyncpa [#allocation3 + $0x1], 1 }

// kernel: residual_block_forward.4
= control target key start
LH: loop header
LB: loop body
LE: loop exit
PB: predicated region body
PF: predicated region fallthrough
CT: control target
= control target key end

     0   :  { %s2193_s18 = smov 0   ;;  %s2458_s0 = inlined_call_operand.vmem [shape: bf16[2,8,8,32], index: 0, kind: input, shape index: {}]   ;;  %s2459_s1 = inlined_call_operand.vmem [shape: f32[1,32], index: 1, kind: input, shape index: {}]   ;;  %s2460_s2 = inlined_call_operand.vmem [shape: f32[1,32], index: 2, kind: input, shape index: {}]   ;;  %s2461_s3 = inlined_call_operand.vmem [shape: bf16[288,32], index: 3, kind: input, shape index: {}]   ;;  %s2462_s4 = inlined_call_operand.vmem [shape: bf16[2,64,32], index: 4, kind: output, shape index: {0}]   ;;  %s2463_s5 = inlined_call_operand.vmem [shape: f32[2,2,32], index: 5, kind: output, shape index: {1}]  }
   0x1 LB: > { %s1720_s19 = sadd.s32 4294967295, %s2160_s18   ;;  %p1724_p0 = scmp.ge.s32.totalorder %s2160_s18, 1  ;;  %s2160_s18 = sphi %s2193_s18, %s16_s18  }
   0x2   : > { %p190_p1 = scmp.lt.s32.totalorder %s2160_s18, 3 }
   0x4   : > { %p191_p2 = pnand %p1724_p0, %p190_p1 }
   0x5   : > { %v2136_v0 = vld [vmem:[%s2461_s3 + $0x10] sm:$0xff] (!%p191_p2)   ;;  %p222_p3 = scmp.lt.s32.totalorder (!%p191_p2), %s1720_s19, 1  ;;  %v2207_v1 = vld [vmem:[%s2461_s3 + $0x40] sm:$0xff] (!%p191_p2)   ;;  %vm291_vm0 = vcmask (!%p191_p2), 261120   ;;  %v2138_v2 = vld [vmem:[%s2461_s3 + $0x18] sm:$0xff] (!%p191_p2)   ;;  %v2162_v5 = vmov (!%p191_p2), 0.0  }
   0x6   : > { %194 = sbr.rel (%p191_p2) target bundleno = 345 (0x159), region = 36  ;;  %1951 = vmatprep.subr.bf16.mxu1 (!%p191_p2), %v2136_v0  ;;  %1999 = vmatprep.subr.bf16.mxu0 (!%p191_p2), %v2207_v1  ;;  %v2218_v3 = vld [vmem:[%s2461_s3 + $0x48] sm:$0xff] (!%p191_p2)   ;;  %v1730_v4 = vld [vmem:[%s2459_s1] ss:$0 sm:$0xff] (!%p191_p2)  ;;  %292 = vst.msk [vmem:[#allocation2] sm:$0xff] (!%p191_p2), %vm291_vm0, %v2162_v5  ;;  %vm293_vm1 = vcmask (!%p191_p2), 254976  }
   0x7   : > { %1952 = vmatpush3.bf16.msra.mxu1 (!%p191_p2), %v2136_v0  ;;  %2000 = vmatpush3.bf16.msra.mxu0 (!%p191_p2), %v2207_v1  ;;  %295 = vst.msk [vmem:[#allocation2 + $0x10] sm:$0xff] (!%p191_p2), %vm291_vm0, %v2162_v5  ;;  %297 = vst.msk [vmem:[#allocation2 + $0x20] sm:$0xff] (!%p191_p2), %vm291_vm0, %v2162_v5  ;;  %v2256_v6 = vld [vmem:[%s2461_s3] sm:$0xff] (!%p191_p2)   ;;  %v2262_v10 = vld [vmem:[%s2461_s3 + $0x50] sm:$0xff] (!%p191_p2)   ;;  %vm1572_vm2 = vcmask (!%p191_p2), 257024   ;;  %vm1631_vm3 = vcmask (!%p191_p2), 1040384  }
   0x8   : > { %1953 = vmatprep.subr.bf16.mxu1 (!%p191_p2), %v2138_v2  ;;  %299 = vst.msk [vmem:[#allocation2 + $0x30] sm:$0xff] (!%p191_p2), %vm291_vm0, %v2162_v5  ;;  %301 = vst.msk [vmem:[#allocation2 + $0x40] sm:$0xff] (!%p191_p2), %vm291_vm0, %v2162_v5  ;;  %2001 = vmatprep.subr.bf16.mxu0 (!%p191_p2), %v2218_v3  ;;  %v1731_v12 = vld [vmem:[%s2460_s2] ss:$0 sm:$0xff] (!%p191_p2)  ;;  %v2142_v56 = vld [vmem:[%s2461_s3 + $0x58] sm:$0xff] (!%p191_p2)  }
   0x9   : > { %303 = vst.msk [vmem:[#allocation2 + $0x50] sm:$0xff] (!%p191_p2), %vm291_vm0, %v2162_v5  ;;  %305 = vst.msk [vmem:[#allocation2 + $0x60] sm:$0xff] (!%p191_p2), %vm291_vm0, %v2162_v5  ;;  %v2143_v59 = vld [vmem:[%s2461_s3 + $0x8] sm:$0xff] (!%p191_p2)   ;;  %v2144_v63 = vld [vmem:[%s2461_s3 + $0x60] sm:$0xff] (!%p191_p2)  }
   0xa   : > { %307 = vst.msk [vmem:[#allocation2 + $0x70] sm:$0xff] (!%p191_p2), %vm291_vm0, %v2162_v5  ;;  %309 = vst.msk [vmem:[#allocation2 + $0x80] sm:$0xff] (!%p191_p2), %vm291_vm0, %v2162_v5 }
   0xb   : > { %311 = vst.msk [vmem:[#allocation2 + $0x90] sm:$0xff] (!%p191_p2), %vm291_vm0, %v2162_v5  ;;  %1954 = vmatpush3.bf16.msra.mxu1 (!%p191_p2), %v2138_v2  ;;  %2002 = vmatpush3.bf16.msra.mxu0 (!%p191_p2), %v2218_v3 }
   0xc   : > { %294 = vst.msk [vmem:[#allocation2 + $0x8] sm:$0x3] (!%p191_p2), %vm293_vm1, %v2162_v5  ;;  %296 = vst.msk [vmem:[#allocation2 + $0x18] sm:$0x3] (!%p191_p2), %vm293_vm1, %v2162_v5  ;;  %1963 = vmatprep.subr.bf16.mxu1 (!%p191_p2), %v2256_v6  ;;  %2011 = vmatprep.subr.bf16.mxu0 (!%p191_p2), %v2262_v10 }
   0xd   : > { %s2465_s19 = smov (!%p222_p3, %s1720_s19), 1  ;;  %298 = vst.msk [vmem:[#allocation2 + $0x28] sm:$0x3] %vm293_vm1, %v2162_v5  ;;  %300 = vst.msk [vmem:[#allocation2 + $0x38] sm:$0x3] %vm293_vm1, %v2162_v5  ;;  %v358_v0 = vld [vmem:[#allocation2] sm:$0xff] }
   0xe   : > { %s1832_s28 = sshll.u32 %s2465_s19, 5  ;;  %302 = vst.msk [vmem:[#allocation2 + $0x48] sm:$0x3] %vm293_vm1, %v2162_v5  ;;  %304 = vst.msk [vmem:[#allocation2 + $0x58] sm:$0x3] %vm293_vm1, %v2162_v5 }
   0xf   : > { %s2241_s8 = scalar_lea.vmem %s2458_s0, %s1832_s28  ;;  %306 = vst.msk [vmem:[#allocation2 + $0x68] sm:$0x3] %vm293_vm1, %v2162_v5  ;;  %308 = vst.msk [vmem:[#allocation2 + $0x78] sm:$0x3] %vm293_vm1, %v2162_v5  ;;  %s2416_s21 = scalar_lea.vmem %s2462_s4, %s1832_s28 }
  0x10   : > { %310 = vst.msk [vmem:[#allocation2 + $0x88] sm:$0x3] %vm293_vm1, %v2162_v5  ;;  %312 = vst.msk [vmem:[#allocation2 + $0x98] sm:$0x3] %vm293_vm1, %v2162_v5  ;;  %v1879_v7 = vld [vmem:[%s2241_s8] sm:$0xff]   ;;  %v1894_v11 = vld [vmem:[%s2241_s8 + $0x8] sm:$0xff]  }
  0x11   : > { %v1880_v8 = vunpack.c.l.bf16 %v1879_v7  ;;  %v1881_v9 = vunpack.c.h.bf16 %v1879_v7  ;;  %v1884_v13 = vunpack.c.l.bf16 %v1894_v11  ;;  %v1885_v14 = vunpack.c.h.bf16 %v1894_v11  ;;  %v1895_v15 = vld [vmem:[%s2241_s8 + $0x10] sm:$0xff]   ;;  %v1896_v22 = vld [vmem:[%s2241_s8 + $0x18] sm:$0xff]   ;;  %s1729_s28 = sshll.u32 %s2465_s19, 1 }
  0x12   : > { %v1888_v18 = vunpack.c.l.bf16 %v1895_v15  ;;  %v1889_v19 = vunpack.c.h.bf16 %v1895_v15  ;;  %v1892_v26 = vunpack.c.l.bf16 %v1896_v22  ;;  %v1893_v30 = vunpack.c.h.bf16 %v1896_v22  ;;  %v2146_v15 = vld [vmem:[%s2461_s3 + $0x68] sm:$0xff]   ;;  %s235_s24 = scalar_lea.vmem %s2463_s5, %s1729_s28 }
  0x13   : > { %v261_v16 = vmul.f32 %v1880_v8, %v1730_v4  ;;  %v262_v17 = vmul.f32 %v1881_v9, %v1730_v4  ;;  %v263_v20 = vmul.f32 %v1884_v13, %v1730_v4  ;;  %v264_v21 = vmul.f32 %v1885_v14, %v1730_v4  ;;  %v374_v45 = vld [vmem:[#allocation2 + $0x1] sm:$0xff] }
  0x14   : > { %v265_v25 = vmul.f32 %v1888_v18, %v1730_v4  ;;  %v266_v29 = vmul.f32 %v1889_v19, %v1730_v4  ;;  %v267_v34 = vmul.f32 %v1892_v26, %v1730_v4  ;;  %v268_v38 = vmul.f32 %v1893_v30, %v1730_v4  ;;  %v2145_v4 = vld [vmem:[%s2461_s3 + $0x20] sm:$0xff]   ;;  %v2147_v22 = vld [vmem:[%s2461_s3 + $0x28] sm:$0xff]  }
  0x15   : > { %v275_v23 = vadd.f32 %v1731_v12, %v261_v16  ;;  %v276_v24 = vadd.f32 %v1731_v12, %v262_v17  ;;  %v277_v27 = vadd.f32 %v1731_v12, %v263_v20  ;;  %v278_v28 = vadd.f32 %v1731_v12, %v264_v21 }
  0x16   : > { %v279_v33 = vadd.f32 %v1731_v12, %v265_v25  ;;  %v280_v37 = vadd.f32 %v1731_v12, %v266_v29  ;;  %v281_v40 = vadd.f32 %v1731_v12, %v267_v34  ;;  %v282_v42 = vadd.f32 %v1731_v12, %v268_v38  ;;  %v1148_v34 = vld [vmem:[#allocation2 + $0x90] sm:$0xff] }
  0x17   : > { %v283_v31 = vmax.f32 %v275_v23, 0.0  ;;  %v284_v32 = vmax.f32 %v276_v24, 0.0  ;;  %v285_v35 = vmax.f32 %v277_v27, 0.0  ;;  %v286_v36 = vmax.f32 %v278_v28, 0.0  ;;  %v2148_v23 = vld [vmem:[%s2461_s3 + $0x70] sm:$0xff]   ;;  %v608_v27 = vld [vmem:[#allocation2 + $0x2] sm:$0xff] }
  0x18   : > { %v287_v39 = vmax.f32 %v279_v33, 0.0  ;;  %v288_v41 = vmax.f32 %v280_v37, 0.0  ;;  %v289_v43 = vmax.f32 %v281_v40, 0.0  ;;  %v290_v44 = vmax.f32 %v282_v42, 0.0  ;;  %v2149_v28 = vld [vmem:[%s2461_s3 + $0x30] sm:$0xff]   ;;  %v2152_v37 = vld [vmem:[%s2461_s3 + $0x80] sm:$0xff]  }
  0x19   : > { %314 = vst.msk [vmem:[#allocation2 + $0x11] sm:$0xff] %vm291_vm0, %v283_v31  ;;  %315 = vst.msk [vmem:[#allocation2 + $0x21] sm:$0xff] %vm291_vm0, %v284_v32  ;;  %v2150_v31 = vld [vmem:[%s2461_s3 + $0x78] sm:$0xff]  }
  0x1a   : > { %316 = vst.msk [vmem:[#allocation2 + $0x31] sm:$0xff] %vm291_vm0, %v285_v35  ;;  %317 = vst.msk [vmem:[#allocation2 + $0x41] sm:$0xff] %vm291_vm0, %v286_v36  ;;  %v2151_v36 = vld [vmem:[%s2461_s3 + $0x38] sm:$0xff]  }
  0x1b   : > { %318 = vst.msk [vmem:[#allocation2 + $0x51] sm:$0xff] %vm291_vm0, %v287_v39  ;;  %319 = vst.msk [vmem:[#allocation2 + $0x61] sm:$0xff] %vm291_vm0, %v288_v41  ;;  %v2153_v41 = vld [vmem:[%s2461_s3 + $0x88] sm:$0xff]  }
  0x1c   : > { %320 = vst.msk [vmem:[#allocation2 + $0x71] sm:$0xff] %vm291_vm0, %v289_v43  ;;  %321 = vst.msk [vmem:[#allocation2 + $0x81] sm:$0xff] %vm291_vm0, %v290_v44  ;;  %v1281_v44 = vld [vmem:[#allocation2 + $0x91] sm:$0xff] }
  0x20   : > { %v375_v46 = vld [vmem:[#allocation2 + $0x11] sm:$0xff]  ;;  %v875_v47 = vld [vmem:[#allocation2 + $0x21] sm:$0xff] }
  0x21   : > { %v2281_v48 = vld [vmem:[#allocation2 + $0x12] sm:$0xff]  ;;  %v1834_v49 = vpack.c.bf16 %v375_v46, %v374_v45  ;;  %v1850_v50 = vpack.c.bf16 %v875_v47, %v375_v46  ;;  %v877_v52 = vld [vmem:[#allocation2 + $0x41] sm:$0xff] }
  0x22   : > { %v377_v51 = vld [vmem:[#allocation2 + $0x31] sm:$0xff]  ;;  %v2283_v53 = vld [vmem:[#allocation2 + $0x22] sm:$0xff]  ;;  %v1842_v30 = vpack.c.bf16 %v2281_v48, %v608_v27 }
  0x23   : > { %v2285_v54 = vpack.c.bf16 %v377_v51, %v875_v47  ;;  %v1851_v55 = vpack.c.bf16 %v877_v52, %v377_v51  ;;  %v2290_v57 = vld [vmem:[#allocation2 + $0x51] sm:$0xff]  ;;  %1955 = vmatprep.mubr.msk.bf16.mxu1 %vm291_vm0, %v1834_v49  ;;  %2003 = vmatprep.mubr.msk.bf16.mxu0 %vm291_vm0, %v1850_v50  ;;  %v1854_v60 = vpack.c.bf16 %v2283_v53, %v2281_v48  ;;  %v2307_v61 = vld [vmem:[#allocation2 + $0x61] sm:$0xff] }
  0x24   : > { %v2295_v58 = vpack.c.bf16 %v2290_v57, %v877_v52  ;;  %v2309_v62 = vld [vmem:[#allocation2 + $0x71] sm:$0xff]  ;;  %v1010_v7 = vld [vmem:[#allocation2 + $0x42] sm:$0xff]  ;;  %v1852_v48 = vpack.c.bf16 %v2307_v61, %v2290_v57 }
  0x25   : > { %1956 = vmatmul.mubr.msk.bf16.vlgmr.msra.gmra.mrb[0].mxu1 %vm291_vm0, %v2285_v54  ;;  %2004 = vmatmul.mubr.msk.bf16.vlgmr.msra.gmra.mrb[0].mxu0 %vm291_vm0, %v1851_v55  ;;  %v2316_v2 = vld [vmem:[#allocation2 + $0x10] sm:$0xff]  ;;  %v2324_v5 = vpack.c.bf16 %v2309_v62, %v2307_v61  ;;  %v360_v12 = vld [vmem:[#allocation2 + $0x20] sm:$0xff] }
  0x26   : > { %1964 = vmatpush3.bf16.msra.mxu1 %v2256_v6  ;;  %2012 = vmatpush3.bf16.msra.mxu0 %v2262_v10  ;;  %v1009_v6 = vld [vmem:[#allocation2 + $0x32] sm:$0xff]  ;;  %v1838_v8 = vpack.c.bf16 %v2316_v2, %v358_v0  ;;  %v1012_v10 = vld [vmem:[#allocation2 + $0x62] sm:$0xff]  ;;  %v1846_v40 = vpack.c.bf16 %v360_v12, %v2316_v2 }
  0x27   : > { %2013 = vmatprep.subr.bf16.mxu0 %v2142_v56  ;;  %1959 = vmatprep.mubr.msk.bf16.mxu1 %vm291_vm0, %v2295_v58  ;;  %v1011_v9 = vld [vmem:[#allocation2 + $0x52] sm:$0xff]  ;;  %v1855_v11 = vpack.c.bf16 %v1010_v7, %v1009_v6  ;;  %v2335_v16 = vld [vmem:[#allocation2 + $0x40] sm:$0xff]  ;;  %v1843_v32 = vpack.c.bf16 %v1009_v6, %v2283_v53 }
  0x28   : > { %1965 = vmatprep.subr.bf16.mxu1 %v2143_v59  ;;  %2015 = vmatprep.mubr.msk.bf16.mxu0 %vm291_vm0, %v1854_v60  ;;  %v2330_v13 = vld [vmem:[#allocation2 + $0x30] sm:$0xff]  ;;  %v1856_v14 = vpack.c.bf16 %v1012_v10, %v1011_v9  ;;  %v2342_v20 = vld [vmem:[#allocation2 + $0x82] sm:$0xff]  ;;  %v1844_v35 = vpack.c.bf16 %v1011_v9, %v1010_v7 }
  0x29   : > { %v2337_v17 = vld [vmem:[#allocation2 + $0x50] sm:$0xff]  ;;  %v1839_v18 = vpack.c.bf16 %v2330_v13, %v360_v12  ;;  %v364_v25 = vld [vmem:[#allocation2 + $0x60] sm:$0xff]  ;;  %v1847_v42 = vpack.c.bf16 %v2335_v16, %v2330_v13 }
  0x2a   : > { %2014 = vmatpush3.bf16.msra.mxu0 %v2142_v56  ;;  %1966 = vmatpush3.bf16.msra.mxu1 %v2143_v59  ;;  %v1013_v19 = vld [vmem:[#allocation2 + $0x72] sm:$0xff]  ;;  %v1840_v21 = vpack.c.bf16 %v2337_v17, %v2335_v16  ;;  %v1147_v33 = vld [vmem:[#allocation2 + $0x80] sm:$0xff]  ;;  %v1848_v45 = vpack.c.bf16 %v364_v25, %v2337_v17 }
  0x2b   : > { %2023 = vmatprep.subr.bf16.mxu0 %v2144_v63  ;;  %1975 = vmatprep.subr.bf16.mxu1 %v2145_v4  ;;  %v1857_v24 = vpack.c.bf16 %v2342_v20, %v1013_v19  ;;  %v365_v26 = vld [vmem:[#allocation2 + $0x70] sm:$0xff]  ;;  %v1861_v38 = vpack.c.bf16 %v1148_v34, %v1147_v33  ;;  %v1845_v39 = vpack.c.bf16 %v1013_v19, %v1012_v10  ;;  %v1280_v43 = vld [vmem:[#allocation2 + $0x81] sm:$0xff] }
  0x2c   : > { %v1841_v29 = vpack.c.bf16 %v365_v26, %v364_v25  ;;  %v1865_v46 = vpack.c.bf16 %v1281_v44, %v1280_v43  ;;  %v1849_v47 = vpack.c.bf16 %v1147_v33, %v365_v26  ;;  %v1853_v49 = vpack.c.bf16 %v1280_v43, %v2309_v62 }
  0x2d   : > { %1960 = vmatmul.mubr.msk.bf16.gmra.mrb[4].mxu1 %vm291_vm0, %v2324_v5 }
  0x2e   : > { %1967 = vmatprep.mubr.msk.bf16.mxu1 %vm291_vm0, %v1838_v8 }
  0x31   : > { %2016 = vmatmul.mubr.msk.bf16.vlgmr.msra.gmra.mrb[0].mxu0 %vm291_vm0, %v1855_v11 }
  0x32   : > { %2024 = vmatpush3.bf16.msra.mxu0 %v2144_v63  ;;  %2019 = vmatprep.mubr.msk.bf16.mxu0 %vm291_vm0, %v1856_v14 }
  0x33   : > { %2025 = vmatprep.subr.bf16.mxu0 %v2146_v15 }
  0x35   : > { %1968 = vmatmul.mubr.msk.bf16.vlgmr.msra.gmra.mrb[0].mxu1 %vm291_vm0, %v1839_v18 }
  0x36   : > { %1976 = vmatpush3.bf16.msra.mxu1 %v2145_v4  ;;  %2026 = vmatpush3.bf16.msra.mxu0 %v2146_v15 }
  0x37   : > { %1971 = vmatprep.mubr.msk.bf16.mxu1 %vm291_vm0, %v1840_v21  ;;  %1977 = vmatprep.subr.bf16.mxu1 %v2147_v22 }
  0x38   : > { %2035 = vmatprep.subr.bf16.mxu0 %v2148_v23 }
  0x39   : > { %2020 = vmatmul.mubr.msk.bf16.gmra.mrb[4].mxu0 %vm291_vm0, %v1857_v24 }
  0x3a   : > { %1978 = vmatpush3.bf16.msra.mxu1 %v2147_v22  ;;  %2027 = vmatprep.mubr.msk.bf16.mxu0 %vm291_vm0, %v1839_v18 }
  0x3b   : > { %1987 = vmatprep.subr.bf16.mxu1 %v2149_v28 }
  0x3d   : > { %1972 = vmatmul.mubr.msk.bf16.gmra.mrb[4].mxu1 %vm291_vm0, %v1841_v29 }
  0x3e   : > { %1979 = vmatprep.mubr.msk.bf16.mxu1 %vm291_vm0, %v1842_v30 }
  0x41   : > { %2028 = vmatmul.mubr.msk.bf16.vlgmr.msra.gmra.mrb[0].mxu0 %vm291_vm0, %v1840_v21 }
  0x42   : > { %2036 = vmatpush3.bf16.msra.mxu0 %v2148_v23  ;;  %2031 = vmatprep.mubr.msk.bf16.mxu0 %vm291_vm0, %v1841_v29 }
  0x43   : > { %2037 = vmatprep.subr.bf16.mxu0 %v2150_v31 }
  0x45   : > { %1980 = vmatmul.mubr.msk.bf16.vlgmr.msra.gmra.mrb[0].mxu1 %vm291_vm0, %v1843_v32 }
  0x46   : > { %1988 = vmatpush3.bf16.msra.mxu1 %v2149_v28  ;;  %2038 = vmatpush3.bf16.msra.mxu0 %v2150_v31 }
  0x47   : > { %1983 = vmatprep.mubr.msk.bf16.mxu1 %vm291_vm0, %v1844_v35  ;;  %1989 = vmatprep.subr.bf16.mxu1 %v2151_v36 }
  0x48   : > { %2047 = vmatprep.subr.bf16.mxu0 %v2152_v37 }
  0x49   : > { %2032 = vmatmul.mubr.msk.bf16.gmra.mrb[4].mxu0 %vm291_vm0, %v1861_v38 }
  0x4a   : > { %1990 = vmatpush3.bf16.msra.mxu1 %v2151_v36  ;;  %2039 = vmatprep.mubr.msk.bf16.mxu0 %vm291_vm0, %v2285_v54 }
  0x4b   : > { %2059 = vmatprep.subr.bf16.mxu1 %v2207_v1 }
  0x4d   : > { %1984 = vmatmul.mubr.msk.bf16.gmra.mrb[4].mxu1 %vm291_vm0, %v1845_v39 }
  0x4e   : > { %1991 = vmatprep.mubr.msk.bf16.mxu1 %vm291_vm0, %v1846_v40 }
  0x51   : > { %2040 = vmatmul.mubr.msk.bf16.vlgmr.msra.gmra.mrb[0].mxu0 %vm291_vm0, %v2295_v58 }
  0x52   : > { %2048 = vmatpush3.bf16.msra.mxu0 %v2152_v37  ;;  %2043 = vmatprep.mubr.msk.bf16.mxu0 %vm291_vm0, %v2324_v5 }
  0x53   : > { %2049 = vmatprep.subr.bf16.mxu0 %v2153_v41 }
  0x55   : > { %1992 = vmatmul.mubr.msk.bf16.vlgmr.msra.gmra.mrb[0].mxu1 %vm291_vm0, %v1847_v42 }
  0x56   : > { %2061 = vmatpush3.bf16.msra.mxu1 %v2207_v1  ;;  %2050 = vmatpush3.bf16.msra.mxu0 %v2153_v41  ;;  %v1414_v1 = vld [vmem:[#allocation2 + $0x92] sm:$0xff] }
  0x57   : > { %1995 = vmatprep.mubr.msk.bf16.mxu1 %vm291_vm0, %v1848_v45  ;;  %2060 = vmatprep.subr.bf16.mxu1 %v2218_v3  ;;  %v1869_v50 = vpack.c.bf16 %v1414_v1, %v2342_v20 }
  0x59   : > { %2044 = vmatmul.mubr.msk.bf16.gmra.mrb[4].mxu0 %vm291_vm0, %v1865_v46 }
  0x5a   : > { %2062 = vmatpush3.bf16.msra.mxu1 %v2218_v3  ;;  %2051 = vmatprep.mubr.msk.bf16.mxu0 %vm291_vm0, %v1843_v32 }
  0x5d   : > { %1996 = vmatmul.mubr.msk.bf16.gmra.mrb[4].mxu1 %vm291_vm0, %v1849_v47 }
  0x5e   : > { %2007 = vmatprep.mubr.msk.bf16.mxu1 %vm291_vm0, %v1852_v48 }
  0x61   : > { %2052 = vmatmul.mubr.msk.bf16.vlgmr.msra.gmra.mrb[0].mxu0 %vm291_vm0, %v1844_v35 }
  0x62   : > { %2055 = vmatprep.mubr.msk.bf16.mxu0 %vm291_vm0, %v1845_v39 }
  0x69   : > { %2008 = vmatmul.mubr.msk.bf16.vlgmr.msra.gmra.mrb[4].mxu1 %vm291_vm0, %v1853_v49  ;;  %2056 = vmatmul.mubr.msk.bf16.gmra.mrb[4].mxu0 %vm291_vm0, %v1869_v50 }
 0x128   : > { %v1993_v3 = vpop.f32.mrb[0].mxu1 }
 0x129   : > { %v835_v51 = vpop.f32.mrb[1].mxu1 }
 0x12a   : > { %v1994_v52 = vpop.f32.mrb[2].mxu1 }
 0x12b   : > { %v838_v53 = vpop.f32.mrb[3].mxu1 }
 0x134   : > { %v2053_v54 = vpop.f32.mrb[0].mxu0 }
 0x135   : > { %v2063_v55 = vadd.f32 %v2053_v54, %v1993_v3  ;;  %v1501_v56 = vpop.f32.mrb[1].mxu0 }
 0x136   : > { %v2064_v57 = vadd.f32 %v1501_v56, %v835_v51  ;;  %v2054_v58 = vpop.f32.mrb[2].mxu0 }
 0x137   : > { %v1872_v59 = vpack.c.bf16 %v2063_v55, %v2063_v55  ;;  %v2065_v60 = vadd.f32 %v2054_v58, %v1994_v52  ;;  %v1504_v61 = vpop.f32.mrb[3].mxu0  ;;  %v1604_v2 = vmul.f32 %v2063_v55, %v2063_v55  ;;  %v1584_v11 = vsel %vm291_vm0, %v2063_v55, 0.0 }
 0x138   : > { %v1870_v62 = vpack.c.bf16 %v2064_v57, %v2064_v57  ;;  %v1602_v63 = vmul.f32 %v2064_v57, %v2064_v57  ;;  %v2066_v0 = vadd.f32 %v1504_v61, %v838_v53  ;;  %v1581_v5 = vsel %vm291_vm0, %v2064_v57, 0.0 }
 0x139   : > { %1575 = vst.msk [vmem:[%s2416_s21 + $0x8] sm:$0xf] %vm1572_vm2, %v1872_v59  ;;  %v1873_v4 = vpack.c.bf16 %v2065_v60, %v2065_v60  ;;  %v1605_v9 = vmul.f32 %v2065_v60, %v2065_v60  ;;  %v1613_v21 = vsel %vm291_vm0, %v1604_v2, 0.0  ;;  %v1586_v25 = vsel %vm291_vm0, %v2065_v60, 0.0 }
 0x13a   : > { %1573 = vst.msk [vmem:[%s2416_s21] sm:$0xf] %vm1572_vm2, %v1870_v62  ;;  %v1871_v6 = vpack.c.bf16 %v2066_v0, %v2066_v0  ;;  %v1582_v7 = vsel %vm291_vm0, %v2066_v0, 0.0  ;;  %v1603_v8 = vmul.f32 %v2066_v0, %v2066_v0  ;;  %v1610_v12 = vsel %vm291_vm0, %v1602_v63, 0.0 }
 0x13b   : > { %1576 = vst.msk [vmem:[%s2416_s21 + $0xc] sm:$0xf] %vm1572_vm2, %v1873_v4  ;;  %v1583_v10 = vadd.f32 %v1582_v7, %v1581_v5  ;;  %v1615_v26 = vsel %vm291_vm0, %v1605_v9, 0.0 }
 0x13c   : > { %1574 = vst.msk [vmem:[%s2416_s21 + $0x4] sm:$0xf] %vm1572_vm2, %v1871_v6  ;;  %v1611_v13 = vsel %vm291_vm0, %v1603_v8, 0.0  ;;  %v2009_v14 = vpop.f32.mrb[4].mxu1  ;;  %v2057_v15 = vpop.f32.mrb[4].mxu0 }
 0x13d   : > { %v1585_v16 = vadd.f32 %v1584_v11, %v1583_v10  ;;  %v1612_v17 = vadd.f32 %v1611_v13, %v1610_v12  ;;  %v2067_v18 = vadd.f32 %v2057_v15, %v2009_v14  ;;  %v984_v19 = vpop.f32.mrb[5].mxu1  ;;  %v1517_v20 = vpop.f32.mrb[5].mxu0 }
 0x13e   : > { %v2068_v22 = vadd.f32 %v1517_v20, %v984_v19  ;;  %v2010_v23 = vpop.f32.mrb[6].mxu1  ;;  %v2058_v24 = vpop.f32.mrb[6].mxu0 }
 0x13f   : > { %v1614_v27 = vadd.f32 %v1613_v21, %v1612_v17  ;;  %v1876_v28 = vpack.c.bf16 %v2067_v18, %v2067_v18  ;;  %v987_v29 = vpop.f32.mrb[7].mxu1  ;;  %v1520_v30 = vpop.f32.mrb[7].mxu0  ;;  %v1587_v32 = vadd.f32 %v1586_v25, %v1585_v16  ;;  %v2069_v36 = vadd.f32 %v2058_v24, %v2010_v23 }
 0x140   : > { %v1874_v31 = vpack.c.bf16 %v2068_v22, %v2068_v22  ;;  %v1588_v33 = vsel %vm291_vm0, %v2068_v22, 0.0  ;;  %v1606_v34 = vmul.f32 %v2068_v22, %v2068_v22  ;;  %v2070_v37 = vadd.f32 %v1520_v30, %v987_v29 }
 0x141   : > { %1579 = vst.msk [vmem:[%s2416_s21 + $0x18] sm:$0xf] %vm1572_vm2, %v1876_v28  ;;  %v1616_v35 = vadd.f32 %v1615_v26, %v1614_v27  ;;  %v1589_v38 = vadd.f32 %v1588_v33, %v1587_v32  ;;  %v1877_v41 = vpack.c.bf16 %v2069_v36, %v2069_v36  ;;  %v1608_v42 = vmul.f32 %v2067_v18, %v2067_v18 }
 0x142   : > { %1577 = vst.msk [vmem:[%s2416_s21 + $0x10] sm:$0xf] %vm1572_vm2, %v1874_v31  ;;  %v1617_v39 = vsel %vm291_vm0, %v1606_v34, 0.0  ;;  %v1875_v43 = vpack.c.bf16 %v2070_v37, %v2070_v37  ;;  %v1590_v44 = vsel %vm291_vm0, %v2070_v37, 0.0  ;;  %v1607_v45 = vmul.f32 %v2070_v37, %v2070_v37 }
 0x143   : > { %v1618_v40 = vadd.f32 %v1617_v39, %v1616_v35  ;;  %1580 = vst.msk [vmem:[%s2416_s21 + $0x1c] sm:$0xf] %vm1572_vm2, %v1877_v41  ;;  %v1591_v46 = vadd.f32 %v1590_v44, %v1589_v38  ;;  %v1592_v47 = vsel %vm291_vm0, %v2067_v18, 0.0  ;;  %v1609_v48 = vmul.f32 %v2069_v36, %v2069_v36 }
 0x144   : > { %1578 = vst.msk [vmem:[%s2416_s21 + $0x14] sm:$0xf] %vm1572_vm2, %v1875_v43  ;;  %v1619_v1 = vsel %vm291_vm0, %v1607_v45, 0.0  ;;  %v1621_v3 = vsel %vm291_vm0, %v1608_v42, 0.0  ;;  %v1594_v51 = vsel %vm291_vm0, %v2069_v36, 0.0 }
 0x145   : > { %v1593_v49 = vadd.f32 %v1592_v47, %v1591_v46  ;;  %v1620_v50 = vadd.f32 %v1619_v1, %v1618_v40  ;;  %v1623_v54 = vsel %vm291_vm0, %v1609_v48, 0.0 }
 0x147   : > { %v1595_v52 = vadd.f32 %v1594_v51, %v1593_v49  ;;  %v1622_v53 = vadd.f32 %v1621_v3, %v1620_v50 }
 0x149   : > { %v1596_v55 = vrot.slane %v1595_v52, 4  ;;  %v1624_v56 = vadd.f32 %v1623_v54, %v1622_v53 }
 0x14b   : > { %v1597_v57 = vadd.f32 %v1596_v55, %v1595_v52  ;;  %v1625_v58 = vrot.slane %v1624_v56, 4 }
 0x14d   : > { %v1598_v59 = vrot.slane %v1597_v57, 2  ;;  %v1626_v60 = vadd.f32 %v1625_v58, %v1624_v56 }
 0x14f   : > { %v1599_v61 = vadd.f32 %v1598_v59, %v1597_v57  ;;  %v1627_v62 = vrot.slane %v1626_v60, 2 }
 0x151   : > { %v1600_v63 = vrot.slane %v1599_v61, 1  ;;  %v1628_v0 = vadd.f32 %v1627_v62, %v1626_v60 }
 0x153   : > { %v1629_v2 = vrot.slane %v1628_v0, 1  ;;  %v1601_v4 = vadd.f32 %v1600_v63, %v1599_v61 }
 0x155   : > { %v1630_v5 = vadd.f32 %v1629_v2, %v1628_v0 }
 0x157   : > { %v1632_v6 = vsel %vm1631_vm3, %v1601_v4, %v1630_v5 }
 0x158   : > { %1633 = vst.msk [vmem:[%s235_s24] sm:$0x3] %vm293_vm1, %v1632_v6 }
 0x159 PF: > { %s16_s18 = sadd.s32 1, %s2160_s18  }
 0x15a   : > { %p13_p4 = scmp.ge.s32.totalorder %s16_s18, 4  }
 0x15c   :  { %15 = sbr.rel (!%p13_p4) target bundleno = 1 (0x1), region = 80 }

</bundles_post_ra>
